<compile_context>
chip_gen: v7x
topology: tpu7x:2x2x1
jax: 0.10.0
libtpu: 0.0.40
codegen_flags: <defaults>
</compile_context>

<pallas_src>
import jax
import jax.numpy as jnp
from jax.experimental import pallas as pl
from jax.experimental.pallas import tpu as pltpu


def gru_net_kernel(ids_ref, proj_ref, w_hh_ref, w_lin_ref, bias_ref, out_ref, gi_scr):
    """Fused embedding-gather + GRU recurrence + flattened-time Linear.

    Operands (single invocation, full arrays resident):
      ids_ref   : (B*S,)      int32  SMEM   token ids, row-major (index = b*S + t)
      proj_ref  : (V, 3G)     f32    VMEM   embedding @ W_ih^T + (b_ih + [b_hr, b_hz, 0]),
                                            gates padded to G=128 lanes each
      w_hh_ref  : (G, 3G)     bf16   VMEM   W_hh^T, rows >= H and per-gate lanes >= H are 0
      w_lin_ref : (S, G, O)   bf16   VMEM   W_lin^T split per timestep, rows >= H are 0
      bias_ref  : (2, G)      f32    VMEM   row 0 = b_hn (padded), row 1 = b_lin (padded)
      out_ref   : (B, O)      f32    VMEM
      gi_scr    : (S*B, 3G)   f32    VMEM   gathered pre-projected inputs, time-major
    """
    B, O = out_ref.shape
    G = proj_ref.shape[1] // 3
    S = w_lin_ref.shape[0]

    # (1) Fused embedding gather: copy pre-projected rows into a lane-dense, time-major
    #     scratch.  Token id comes from SMEM; row load uses a dynamic sublane index.
    for t in range(S):
        for b in range(B):
            idx = ids_ref[b * S + t]                                  # SMEM scalar read
            gi_scr[pl.ds(t * B + b, 1), :] = proj_ref[pl.ds(idx, 1), :]

    w_hh = w_hh_ref[...]                         # (G, 3G) bf16, hoisted load
    b_hn = bias_ref[0:1, :]                      # (1, G)  f32
    acc = jnp.broadcast_to(bias_ref[1:2, 0:O], (B, O)).astype(jnp.float32)  # b_lin folded

    # (2) Serial recurrence, statically unrolled (S small & known at trace time).
    # TODO(synk): hold W_hh resident in the MXU across steps via pltpu.matmul_push_rhs /
    # matmul_acc_lhs / matmul_pop once validated on all target generations; jnp.dot
    # re-pushes the (G,3G) RHS every iteration.
    h = jnp.zeros((B, G), jnp.float32)           # padded lanes (>= H) stay exactly 0
    h_b = h.astype(jnp.bfloat16)
    for t in range(S):
        gi = gi_scr[t * B:(t + 1) * B, :]                              # (B, 3G) f32, static slice
        gh = jnp.dot(h_b, w_hh, preferred_element_type=jnp.float32)    # (B, 3G) f32

        rz = jax.nn.sigmoid(gi[:, 0:2 * G] + gh[:, 0:2 * G])           # fused r/z activation
        r = rz[:, 0:G]
        z = rz[:, G:2 * G]
        n = jnp.tanh(gi[:, 2 * G:3 * G] + r * (gh[:, 2 * G:3 * G] + b_hn))
        h = (1.0 - z) * n + z * h                                      # f32 carried state

        # Per-step output projection (off the serial chain): accumulates the flattened-time
        # Linear on the fly instead of materialising a (B, S*H) feature slab.
        h_b = h.astype(jnp.bfloat16)
        acc = acc + jnp.dot(h_b, w_lin_ref[t], preferred_element_type=jnp.float32)

    out_ref[...] = acc.astype(out_ref.dtype)


def pack_params(params):
    """One-time weight pre-pack (outside the per-call hot path).

    Folds b_ih + b_hr + b_hz into a projected-embedding table, pads each gate to its own
    128-lane block, and splits W_lin^T per timestep.  Run once; results are reused by the
    jitted forward.
    """
    H = params["weight_hh"].shape[1]
    O = params["weight_lin"].shape[0]
    S = params["weight_lin"].shape[1] // H
    G = 128                                        # per-gate lane-aligned block width
    assert H <= G

    def pad_gates(m):  # (rows, 3H) -> (rows, 3G), each gate in its own 128-lane block
        r, z, n = m[:, 0:H], m[:, H:2 * H], m[:, 2 * H:3 * H]
        pad = lambda x: jnp.pad(x, ((0, 0), (0, G - H)))
        return jnp.concatenate([pad(r), pad(z), pad(n)], axis=1)

    # Projected embedding table: x @ W_ih^T + b_ih, plus b_hr / b_hz folded in (valid for
    # the r and z gates; b_hn must stay inside gh because r multiplies it).
    b_fold = params["bias_ih"] + jnp.concatenate(
        [params["bias_hh"][:2 * H], jnp.zeros((H,), jnp.float32)])
    proj = pad_gates(params["embedding"] @ params["weight_ih"].T + b_fold[None, :])
    proj = proj.astype(jnp.float32)                                    # (V, 3G)

    w_hh = jnp.zeros((G, 3 * G), jnp.float32)
    w_hh = w_hh.at[:H, :].set(pad_gates(params["weight_hh"].T)).astype(jnp.bfloat16)

    w_lin_t = params["weight_lin"].T.reshape(S, H, O)                  # row t*H+j -> [t, j, :]
    w_lin = jnp.zeros((S, G, O), jnp.float32)
    w_lin = w_lin.at[:, :H, :].set(w_lin_t).astype(jnp.bfloat16)

    bias = jnp.zeros((2, G), jnp.float32)
    bias = bias.at[0, :H].set(params["bias_hh"][2 * H:3 * H])          # b_hn
    bias = bias.at[1, :O].set(params["bias_lin"])                      # b_lin

    return {"proj": proj, "w_hh": w_hh, "w_lin": w_lin, "bias": bias}


@jax.jit
def gru_net_forward(X, packed):
    """Forward pass matching GRUNet.forward (num_layers=1, dropout=0), fully fused."""
    B, S = X.shape
    O = packed["w_lin"].shape[2]
    G3 = packed["proj"].shape[1]

    ids = X.reshape(B * S).astype(jnp.int32)       # row-major: ids[b*S + t], free reshape

    smem = pl.BlockSpec(memory_space=pltpu.MemorySpace.SMEM)
    vmem = pl.BlockSpec(memory_space=pltpu.MemorySpace.VMEM)

    # TODO(synk): for large batches, add a leading "parallel" grid axis over batch tiles
    # (second TensorCore on v7x); at B=4 a single invocation is optimal.
    # TODO(synk): if called repeatedly, amortise weight DMAs across calls via a cross-call
    # weight-prefetch (semaphore + VMEM ref handover) instead of re-sending them each call.
    return pl.pallas_call(
        gru_net_kernel,
        out_shape=jax.ShapeDtypeStruct((B, O), jnp.float32),
        in_specs=[smem, vmem, vmem, vmem, vmem],
        out_specs=vmem,
        scratch_shapes=[pltpu.VMEM((S * B, G3), jnp.float32)],  # gathered gi rows
    )(ids, packed["proj"], packed["w_hh"], packed["w_lin"], packed["bias"])


def reference_forward(X, p):
    """Pure-JAX f32 reference of the same forward pass (for a sanity check)."""
    emb = p["embedding"][X]
    B, S, _ = emb.shape
    H = p["weight_hh"].shape[1]
    h = jnp.zeros((B, H), jnp.float32)
    outs = []
    for t in range(S):
        x = emb[:, t, :]
        gi = x @ p["weight_ih"].T + p["bias_ih"]
        gh = h @ p["weight_hh"].T + p["bias_hh"]
        r = jax.nn.sigmoid(gi[:, :H] + gh[:, :H])
        z = jax.nn.sigmoid(gi[:, H:2 * H] + gh[:, H:2 * H])
        n = jnp.tanh(gi[:, 2 * H:] + r * gh[:, 2 * H:])
        h = (1.0 - z) * n + z * h
        outs.append(h)
    feat = jnp.stack(outs, axis=1).reshape(B, S * H)
    return feat @ p["weight_lin"].T + p["bias_lin"]


def init_params(key, vocab_size, input_size, hidden_size, output_size, seq_len):
    ks = jax.random.split(key, 7)
    s = 0.1
    return {
        "embedding": jax.random.normal(ks[0], (vocab_size, input_size), jnp.float32) * s,
        "weight_ih": jax.random.normal(ks[1], (3 * hidden_size, input_size), jnp.float32) * s,
        "weight_hh": jax.random.normal(ks[2], (3 * hidden_size, hidden_size), jnp.float32) * s,
        "bias_ih":   jax.random.normal(ks[3], (3 * hidden_size,), jnp.float32) * s,
        "bias_hh":   jax.random.normal(ks[4], (3 * hidden_size,), jnp.float32) * s,
        "weight_lin": jax.random.normal(ks[5], (output_size, hidden_size * seq_len), jnp.float32) * s,
        "bias_lin":  jax.random.normal(ks[6], (output_size,), jnp.float32) * s,
    }


if __name__ == "__main__":
    # Small shapes consistent with the module's forward:
    vocab_size, seq_len, input_size, hidden_size, output_size = 32, 8, 16, 32, 8
    batch_size = 4

    key = jax.random.PRNGKey(0)
    k_x, k_p = jax.random.split(key)
    params = init_params(k_p, vocab_size, input_size, hidden_size, output_size, seq_len)
    X = jax.random.randint(k_x, (batch_size, seq_len), 0, vocab_size, dtype=jnp.int32)

    packed = pack_params(params)          # one-time weight pre-pack (outside hot path)
    out = gru_net_forward(X, packed)      # jitted wrapper -> single fused pallas_call
    out = jax.block_until_ready(out)

    ref = reference_forward(X, params)
    assert out.shape == (batch_size, output_size)
    assert jnp.allclose(out, ref, atol=2e-2, rtol=2e-2), "mismatch vs reference"

    print("KERNEL_OK")
</pallas_src>

<mosaic_0001>
module attributes {stable_mosaic.version = 11 : i64} {
  func.func @gru_net_kernel(%arg0: memref<32xi32, #tpu.memory_space<smem>>, %arg1: memref<32x384xf32, #tpu.memory_space<vmem>>, %arg2: memref<128x384xbf16, #tpu.memory_space<vmem>>, %arg3: memref<8x128x8xbf16, #tpu.memory_space<vmem>>, %arg4: memref<2x128xf32, #tpu.memory_space<vmem>>, %arg5: memref<4x8xf32, #tpu.memory_space<vmem>>, %arg6: memref<32x384xf32, #tpu.memory_space<vmem>>) attributes {dimension_semantics = [], scalar_prefetch = 0 : i64, scratch_operands = 1 : i64, tpu.core_type = #tpu.core_type<tc>} {
    %c0 = arith.constant 0 : index
    %0 = memref.load %arg0[%c0] : memref<32xi32, #tpu.memory_space<smem>>
    %1 = arith.index_cast %0 : i32 to index
    %c0_0 = arith.constant 0 : index
    %2 = vector.load %arg1[%1, %c0_0] : memref<32x384xf32, #tpu.memory_space<vmem>>, vector<1x384xf32>
    %c0_1 = arith.constant 0 : index
    %c0_2 = arith.constant 0 : index
    %3 = vector.load %arg6[%c0_1, %c0_2] : memref<32x384xf32, #tpu.memory_space<vmem>>, vector<1x384xf32>
    tpu.vector_store %arg6[%c0_1, %c0_2], %2 {strides = array<i32>} : memref<32x384xf32, #tpu.memory_space<vmem>>, vector<1x384xf32>,
    %c8 = arith.constant 8 : index
    %4 = memref.load %arg0[%c8] : memref<32xi32, #tpu.memory_space<smem>>
    %5 = arith.index_cast %4 : i32 to index
    %c0_3 = arith.constant 0 : index
    %6 = vector.load %arg1[%5, %c0_3] : memref<32x384xf32, #tpu.memory_space<vmem>>, vector<1x384xf32>
    %c1 = arith.constant 1 : index
    %c0_4 = arith.constant 0 : index
    %7 = vector.load %arg6[%c1, %c0_4] : memref<32x384xf32, #tpu.memory_space<vmem>>, vector<1x384xf32>
    tpu.vector_store %arg6[%c1, %c0_4], %6 {strides = array<i32>} : memref<32x384xf32, #tpu.memory_space<vmem>>, vector<1x384xf32>,
    %c16 = arith.constant 16 : index
    %8 = memref.load %arg0[%c16] : memref<32xi32, #tpu.memory_space<smem>>
    %9 = arith.index_cast %8 : i32 to index
    %c0_5 = arith.constant 0 : index
    %10 = vector.load %arg1[%9, %c0_5] : memref<32x384xf32, #tpu.memory_space<vmem>>, vector<1x384xf32>
    %c2 = arith.constant 2 : index
    %c0_6 = arith.constant 0 : index
    %11 = vector.load %arg6[%c2, %c0_6] : memref<32x384xf32, #tpu.memory_space<vmem>>, vector<1x384xf32>
    tpu.vector_store %arg6[%c2, %c0_6], %10 {strides = array<i32>} : memref<32x384xf32, #tpu.memory_space<vmem>>, vector<1x384xf32>,
    %c24 = arith.constant 24 : index
    %12 = memref.load %arg0[%c24] : memref<32xi32, #tpu.memory_space<smem>>
    %13 = arith.index_cast %12 : i32 to index
    %c0_7 = arith.constant 0 : index
    %14 = vector.load %arg1[%13, %c0_7] : memref<32x384xf32, #tpu.memory_space<vmem>>, vector<1x384xf32>
    %c3 = arith.constant 3 : index
    %c0_8 = arith.constant 0 : index
    %15 = vector.load %arg6[%c3, %c0_8] : memref<32x384xf32, #tpu.memory_space<vmem>>, vector<1x384xf32>
    tpu.vector_store %arg6[%c3, %c0_8], %14 {strides = array<i32>} : memref<32x384xf32, #tpu.memory_space<vmem>>, vector<1x384xf32>,
    %c1_9 = arith.constant 1 : index
    %16 = memref.load %arg0[%c1_9] : memref<32xi32, #tpu.memory_space<smem>>
    %17 = arith.index_cast %16 : i32 to index
    %c0_10 = arith.constant 0 : index
    %18 = vector.load %arg1[%17, %c0_10] : memref<32x384xf32, #tpu.memory_space<vmem>>, vector<1x384xf32>
    %c4 = arith.constant 4 : index
    %c0_11 = arith.constant 0 : index
    %19 = vector.load %arg6[%c4, %c0_11] : memref<32x384xf32, #tpu.memory_space<vmem>>, vector<1x384xf32>
    tpu.vector_store %arg6[%c4, %c0_11], %18 {strides = array<i32>} : memref<32x384xf32, #tpu.memory_space<vmem>>, vector<1x384xf32>,
    %c9 = arith.constant 9 : index
    %20 = memref.load %arg0[%c9] : memref<32xi32, #tpu.memory_space<smem>>
    %21 = arith.index_cast %20 : i32 to index
    %c0_12 = arith.constant 0 : index
    %22 = vector.load %arg1[%21, %c0_12] : memref<32x384xf32, #tpu.memory_space<vmem>>, vector<1x384xf32>
    %c5 = arith.constant 5 : index
    %c0_13 = arith.constant 0 : index
    %23 = vector.load %arg6[%c5, %c0_13] : memref<32x384xf32, #tpu.memory_space<vmem>>, vector<1x384xf32>
    tpu.vector_store %arg6[%c5, %c0_13], %22 {strides = array<i32>} : memref<32x384xf32, #tpu.memory_space<vmem>>, vector<1x384xf32>,
    %c17 = arith.constant 17 : index
    %24 = memref.load %arg0[%c17] : memref<32xi32, #tpu.memory_space<smem>>
    %25 = arith.index_cast %24 : i32 to index
    %c0_14 = arith.constant 0 : index
    %26 = vector.load %arg1[%25, %c0_14] : memref<32x384xf32, #tpu.memory_space<vmem>>, vector<1x384xf32>
    %c6 = arith.constant 6 : index
    %c0_15 = arith.constant 0 : index
    %27 = vector.load %arg6[%c6, %c0_15] : memref<32x384xf32, #tpu.memory_space<vmem>>, vector<1x384xf32>
    tpu.vector_store %arg6[%c6, %c0_15], %26 {strides = array<i32>} : memref<32x384xf32, #tpu.memory_space<vmem>>, vector<1x384xf32>,
    %c25 = arith.constant 25 : index
    %28 = memref.load %arg0[%c25] : memref<32xi32, #tpu.memory_space<smem>>
    %29 = arith.index_cast %28 : i32 to index
    %c0_16 = arith.constant 0 : index
    %30 = vector.load %arg1[%29, %c0_16] : memref<32x384xf32, #tpu.memory_space<vmem>>, vector<1x384xf32>
    %c7 = arith.constant 7 : index
    %c0_17 = arith.constant 0 : index
    %31 = vector.load %arg6[%c7, %c0_17] : memref<32x384xf32, #tpu.memory_space<vmem>>, vector<1x384xf32>
    tpu.vector_store %arg6[%c7, %c0_17], %30 {strides = array<i32>} : memref<32x384xf32, #tpu.memory_space<vmem>>, vector<1x384xf32>,
    %c2_18 = arith.constant 2 : index
    %32 = memref.load %arg0[%c2_18] : memref<32xi32, #tpu.memory_space<smem>>
    %33 = arith.index_cast %32 : i32 to index
    %c0_19 = arith.constant 0 : index
    %34 = vector.load %arg1[%33, %c0_19] : memref<32x384xf32, #tpu.memory_space<vmem>>, vector<1x384xf32>
    %c8_20 = arith.constant 8 : index
    %c0_21 = arith.constant 0 : index
    %35 = vector.load %arg6[%c8_20, %c0_21] : memref<32x384xf32, #tpu.memory_space<vmem>>, vector<1x384xf32>
    tpu.vector_store %arg6[%c8_20, %c0_21], %34 {strides = array<i32>} : memref<32x384xf32, #tpu.memory_space<vmem>>, vector<1x384xf32>,
    %c10 = arith.constant 10 : index
    %36 = memref.load %arg0[%c10] : memref<32xi32, #tpu.memory_space<smem>>
    %37 = arith.index_cast %36 : i32 to index
    %c0_22 = arith.constant 0 : index
    %38 = vector.load %arg1[%37, %c0_22] : memref<32x384xf32, #tpu.memory_space<vmem>>, vector<1x384xf32>
    %c9_23 = arith.constant 9 : index
    %c0_24 = arith.constant 0 : index
    %39 = vector.load %arg6[%c9_23, %c0_24] : memref<32x384xf32, #tpu.memory_space<vmem>>, vector<1x384xf32>
    tpu.vector_store %arg6[%c9_23, %c0_24], %38 {strides = array<i32>} : memref<32x384xf32, #tpu.memory_space<vmem>>, vector<1x384xf32>,
    %c18 = arith.constant 18 : index
    %40 = memref.load %arg0[%c18] : memref<32xi32, #tpu.memory_space<smem>>
    %41 = arith.index_cast %40 : i32 to index
    %c0_25 = arith.constant 0 : index
    %42 = vector.load %arg1[%41, %c0_25] : memref<32x384xf32, #tpu.memory_space<vmem>>, vector<1x384xf32>
    %c10_26 = arith.constant 10 : index
    %c0_27 = arith.constant 0 : index
    %43 = vector.load %arg6[%c10_26, %c0_27] : memref<32x384xf32, #tpu.memory_space<vmem>>, vector<1x384xf32>
    tpu.vector_store %arg6[%c10_26, %c0_27], %42 {strides = array<i32>} : memref<32x384xf32, #tpu.memory_space<vmem>>, vector<1x384xf32>,
    %c26 = arith.constant 26 : index
    %44 = memref.load %arg0[%c26] : memref<32xi32, #tpu.memory_space<smem>>
    %45 = arith.index_cast %44 : i32 to index
    %c0_28 = arith.constant 0 : index
    %46 = vector.load %arg1[%45, %c0_28] : memref<32x384xf32, #tpu.memory_space<vmem>>, vector<1x384xf32>
    %c11 = arith.constant 11 : index
    %c0_29 = arith.constant 0 : index
    %47 = vector.load %arg6[%c11, %c0_29] : memref<32x384xf32, #tpu.memory_space<vmem>>, vector<1x384xf32>
    tpu.vector_store %arg6[%c11, %c0_29], %46 {strides = array<i32>} : memref<32x384xf32, #tpu.memory_space<vmem>>, vector<1x384xf32>,
    %c3_30 = arith.constant 3 : index
    %48 = memref.load %arg0[%c3_30] : memref<32xi32, #tpu.memory_space<smem>>
    %49 = arith.index_cast %48 : i32 to index
    %c0_31 = arith.constant 0 : index
    %50 = vector.load %arg1[%49, %c0_31] : memref<32x384xf32, #tpu.memory_space<vmem>>, vector<1x384xf32>
    %c12 = arith.constant 12 : index
    %c0_32 = arith.constant 0 : index
    %51 = vector.load %arg6[%c12, %c0_32] : memref<32x384xf32, #tpu.memory_space<vmem>>, vector<1x384xf32>
    tpu.vector_store %arg6[%c12, %c0_32], %50 {strides = array<i32>} : memref<32x384xf32, #tpu.memory_space<vmem>>, vector<1x384xf32>,
    %c11_33 = arith.constant 11 : index
    %52 = memref.load %arg0[%c11_33] : memref<32xi32, #tpu.memory_space<smem>>
    %53 = arith.index_cast %52 : i32 to index
    %c0_34 = arith.constant 0 : index
    %54 = vector.load %arg1[%53, %c0_34] : memref<32x384xf32, #tpu.memory_space<vmem>>, vector<1x384xf32>
    %c13 = arith.constant 13 : index
    %c0_35 = arith.constant 0 : index
    %55 = vector.load %arg6[%c13, %c0_35] : memref<32x384xf32, #tpu.memory_space<vmem>>, vector<1x384xf32>
    tpu.vector_store %arg6[%c13, %c0_35], %54 {strides = array<i32>} : memref<32x384xf32, #tpu.memory_space<vmem>>, vector<1x384xf32>,
    %c19 = arith.constant 19 : index
    %56 = memref.load %arg0[%c19] : memref<32xi32, #tpu.memory_space<smem>>
    %57 = arith.index_cast %56 : i32 to index
    %c0_36 = arith.constant 0 : index
    %58 = vector.load %arg1[%57, %c0_36] : memref<32x384xf32, #tpu.memory_space<vmem>>, vector<1x384xf32>
    %c14 = arith.constant 14 : index
    %c0_37 = arith.constant 0 : index
    %59 = vector.load %arg6[%c14, %c0_37] : memref<32x384xf32, #tpu.memory_space<vmem>>, vector<1x384xf32>
    tpu.vector_store %arg6[%c14, %c0_37], %58 {strides = array<i32>} : memref<32x384xf32, #tpu.memory_space<vmem>>, vector<1x384xf32>,
    %c27 = arith.constant 27 : index
    %60 = memref.load %arg0[%c27] : memref<32xi32, #tpu.memory_space<smem>>
    %61 = arith.index_cast %60 : i32 to index
    %c0_38 = arith.constant 0 : index
    %62 = vector.load %arg1[%61, %c0_38] : memref<32x384xf32, #tpu.memory_space<vmem>>, vector<1x384xf32>
    %c15 = arith.constant 15 : index
    %c0_39 = arith.constant 0 : index
    %63 = vector.load %arg6[%c15, %c0_39] : memref<32x384xf32, #tpu.memory_space<vmem>>, vector<1x384xf32>
    tpu.vector_store %arg6[%c15, %c0_39], %62 {strides = array<i32>} : memref<32x384xf32, #tpu.memory_space<vmem>>, vector<1x384xf32>,
    %c4_40 = arith.constant 4 : index
    %64 = memref.load %arg0[%c4_40] : memref<32xi32, #tpu.memory_space<smem>>
    %65 = arith.index_cast %64 : i32 to index
    %c0_41 = arith.constant 0 : index
    %66 = vector.load %arg1[%65, %c0_41] : memref<32x384xf32, #tpu.memory_space<vmem>>, vector<1x384xf32>
    %c16_42 = arith.constant 16 : index
    %c0_43 = arith.constant 0 : index
    %67 = vector.load %arg6[%c16_42, %c0_43] : memref<32x384xf32, #tpu.memory_space<vmem>>, vector<1x384xf32>
    tpu.vector_store %arg6[%c16_42, %c0_43], %66 {strides = array<i32>} : memref<32x384xf32, #tpu.memory_space<vmem>>, vector<1x384xf32>,
    %c12_44 = arith.constant 12 : index
    %68 = memref.load %arg0[%c12_44] : memref<32xi32, #tpu.memory_space<smem>>
    %69 = arith.index_cast %68 : i32 to index
    %c0_45 = arith.constant 0 : index
    %70 = vector.load %arg1[%69, %c0_45] : memref<32x384xf32, #tpu.memory_space<vmem>>, vector<1x384xf32>
    %c17_46 = arith.constant 17 : index
    %c0_47 = arith.constant 0 : index
    %71 = vector.load %arg6[%c17_46, %c0_47] : memref<32x384xf32, #tpu.memory_space<vmem>>, vector<1x384xf32>
    tpu.vector_store %arg6[%c17_46, %c0_47], %70 {strides = array<i32>} : memref<32x384xf32, #tpu.memory_space<vmem>>, vector<1x384xf32>,
    %c20 = arith.constant 20 : index
    %72 = memref.load %arg0[%c20] : memref<32xi32, #tpu.memory_space<smem>>
    %73 = arith.index_cast %72 : i32 to index
    %c0_48 = arith.constant 0 : index
    %74 = vector.load %arg1[%73, %c0_48] : memref<32x384xf32, #tpu.memory_space<vmem>>, vector<1x384xf32>
    %c18_49 = arith.constant 18 : index
    %c0_50 = arith.constant 0 : index
    %75 = vector.load %arg6[%c18_49, %c0_50] : memref<32x384xf32, #tpu.memory_space<vmem>>, vector<1x384xf32>
    tpu.vector_store %arg6[%c18_49, %c0_50], %74 {strides = array<i32>} : memref<32x384xf32, #tpu.memory_space<vmem>>, vector<1x384xf32>,
    %c28 = arith.constant 28 : index
    %76 = memref.load %arg0[%c28] : memref<32xi32, #tpu.memory_space<smem>>
    %77 = arith.index_cast %76 : i32 to index
    %c0_51 = arith.constant 0 : index
    %78 = vector.load %arg1[%77, %c0_51] : memref<32x384xf32, #tpu.memory_space<vmem>>, vector<1x384xf32>
    %c19_52 = arith.constant 19 : index
    %c0_53 = arith.constant 0 : index
    %79 = vector.load %arg6[%c19_52, %c0_53] : memref<32x384xf32, #tpu.memory_space<vmem>>, vector<1x384xf32>
    tpu.vector_store %arg6[%c19_52, %c0_53], %78 {strides = array<i32>} : memref<32x384xf32, #tpu.memory_space<vmem>>, vector<1x384xf32>,
    %c5_54 = arith.constant 5 : index
    %80 = memref.load %arg0[%c5_54] : memref<32xi32, #tpu.memory_space<smem>>
    %81 = arith.index_cast %80 : i32 to index
    %c0_55 = arith.constant 0 : index
    %82 = vector.load %arg1[%81, %c0_55] : memref<32x384xf32, #tpu.memory_space<vmem>>, vector<1x384xf32>
    %c20_56 = arith.constant 20 : index
    %c0_57 = arith.constant 0 : index
    %83 = vector.load %arg6[%c20_56, %c0_57] : memref<32x384xf32, #tpu.memory_space<vmem>>, vector<1x384xf32>
    tpu.vector_store %arg6[%c20_56, %c0_57], %82 {strides = array<i32>} : memref<32x384xf32, #tpu.memory_space<vmem>>, vector<1x384xf32>,
    %c13_58 = arith.constant 13 : index
    %84 = memref.load %arg0[%c13_58] : memref<32xi32, #tpu.memory_space<smem>>
    %85 = arith.index_cast %84 : i32 to index
    %c0_59 = arith.constant 0 : index
    %86 = vector.load %arg1[%85, %c0_59] : memref<32x384xf32, #tpu.memory_space<vmem>>, vector<1x384xf32>
    %c21 = arith.constant 21 : index
    %c0_60 = arith.constant 0 : index
    %87 = vector.load %arg6[%c21, %c0_60] : memref<32x384xf32, #tpu.memory_space<vmem>>, vector<1x384xf32>
    tpu.vector_store %arg6[%c21, %c0_60], %86 {strides = array<i32>} : memref<32x384xf32, #tpu.memory_space<vmem>>, vector<1x384xf32>,
    %c21_61 = arith.constant 21 : index
    %88 = memref.load %arg0[%c21_61] : memref<32xi32, #tpu.memory_space<smem>>
    %89 = arith.index_cast %88 : i32 to index
    %c0_62 = arith.constant 0 : index
    %90 = vector.load %arg1[%89, %c0_62] : memref<32x384xf32, #tpu.memory_space<vmem>>, vector<1x384xf32>
    %c22 = arith.constant 22 : index
    %c0_63 = arith.constant 0 : index
    %91 = vector.load %arg6[%c22, %c0_63] : memref<32x384xf32, #tpu.memory_space<vmem>>, vector<1x384xf32>
    tpu.vector_store %arg6[%c22, %c0_63], %90 {strides = array<i32>} : memref<32x384xf32, #tpu.memory_space<vmem>>, vector<1x384xf32>,
    %c29 = arith.constant 29 : index
    %92 = memref.load %arg0[%c29] : memref<32xi32, #tpu.memory_space<smem>>
    %93 = arith.index_cast %92 : i32 to index
    %c0_64 = arith.constant 0 : index
    %94 = vector.load %arg1[%93, %c0_64] : memref<32x384xf32, #tpu.memory_space<vmem>>, vector<1x384xf32>
    %c23 = arith.constant 23 : index
    %c0_65 = arith.constant 0 : index
    %95 = vector.load %arg6[%c23, %c0_65] : memref<32x384xf32, #tpu.memory_space<vmem>>, vector<1x384xf32>
    tpu.vector_store %arg6[%c23, %c0_65], %94 {strides = array<i32>} : memref<32x384xf32, #tpu.memory_space<vmem>>, vector<1x384xf32>,
    %c6_66 = arith.constant 6 : index
    %96 = memref.load %arg0[%c6_66] : memref<32xi32, #tpu.memory_space<smem>>
    %97 = arith.index_cast %96 : i32 to index
    %c0_67 = arith.constant 0 : index
    %98 = vector.load %arg1[%97, %c0_67] : memref<32x384xf32, #tpu.memory_space<vmem>>, vector<1x384xf32>
    %c24_68 = arith.constant 24 : index
    %c0_69 = arith.constant 0 : index
    %99 = vector.load %arg6[%c24_68, %c0_69] : memref<32x384xf32, #tpu.memory_space<vmem>>, vector<1x384xf32>
    tpu.vector_store %arg6[%c24_68, %c0_69], %98 {strides = array<i32>} : memref<32x384xf32, #tpu.memory_space<vmem>>, vector<1x384xf32>,
    %c14_70 = arith.constant 14 : index
    %100 = memref.load %arg0[%c14_70] : memref<32xi32, #tpu.memory_space<smem>>
    %101 = arith.index_cast %100 : i32 to index
    %c0_71 = arith.constant 0 : index
    %102 = vector.load %arg1[%101, %c0_71] : memref<32x384xf32, #tpu.memory_space<vmem>>, vector<1x384xf32>
    %c25_72 = arith.constant 25 : index
    %c0_73 = arith.constant 0 : index
    %103 = vector.load %arg6[%c25_72, %c0_73] : memref<32x384xf32, #tpu.memory_space<vmem>>, vector<1x384xf32>
    tpu.vector_store %arg6[%c25_72, %c0_73], %102 {strides = array<i32>} : memref<32x384xf32, #tpu.memory_space<vmem>>, vector<1x384xf32>,
    %c22_74 = arith.constant 22 : index
    %104 = memref.load %arg0[%c22_74] : memref<32xi32, #tpu.memory_space<smem>>
    %105 = arith.index_cast %104 : i32 to index
    %c0_75 = arith.constant 0 : index
    %106 = vector.load %arg1[%105, %c0_75] : memref<32x384xf32, #tpu.memory_space<vmem>>, vector<1x384xf32>
    %c26_76 = arith.constant 26 : index
    %c0_77 = arith.constant 0 : index
    %107 = vector.load %arg6[%c26_76, %c0_77] : memref<32x384xf32, #tpu.memory_space<vmem>>, vector<1x384xf32>
    tpu.vector_store %arg6[%c26_76, %c0_77], %106 {strides = array<i32>} : memref<32x384xf32, #tpu.memory_space<vmem>>, vector<1x384xf32>,
    %c30 = arith.constant 30 : index
    %108 = memref.load %arg0[%c30] : memref<32xi32, #tpu.memory_space<smem>>
    %109 = arith.index_cast %108 : i32 to index
    %c0_78 = arith.constant 0 : index
    %110 = vector.load %arg1[%109, %c0_78] : memref<32x384xf32, #tpu.memory_space<vmem>>, vector<1x384xf32>
    %c27_79 = arith.constant 27 : index
    %c0_80 = arith.constant 0 : index
    %111 = vector.load %arg6[%c27_79, %c0_80] : memref<32x384xf32, #tpu.memory_space<vmem>>, vector<1x384xf32>
    tpu.vector_store %arg6[%c27_79, %c0_80], %110 {strides = array<i32>} : memref<32x384xf32, #tpu.memory_space<vmem>>, vector<1x384xf32>,
    %c7_81 = arith.constant 7 : index
    %112 = memref.load %arg0[%c7_81] : memref<32xi32, #tpu.memory_space<smem>>
    %113 = arith.index_cast %112 : i32 to index
    %c0_82 = arith.constant 0 : index
    %114 = vector.load %arg1[%113, %c0_82] : memref<32x384xf32, #tpu.memory_space<vmem>>, vector<1x384xf32>
    %c28_83 = arith.constant 28 : index
    %c0_84 = arith.constant 0 : index
    %115 = vector.load %arg6[%c28_83, %c0_84] : memref<32x384xf32, #tpu.memory_space<vmem>>, vector<1x384xf32>
    tpu.vector_store %arg6[%c28_83, %c0_84], %114 {strides = array<i32>} : memref<32x384xf32, #tpu.memory_space<vmem>>, vector<1x384xf32>,
    %c15_85 = arith.constant 15 : index
    %116 = memref.load %arg0[%c15_85] : memref<32xi32, #tpu.memory_space<smem>>
    %117 = arith.index_cast %116 : i32 to index
    %c0_86 = arith.constant 0 : index
    %118 = vector.load %arg1[%117, %c0_86] : memref<32x384xf32, #tpu.memory_space<vmem>>, vector<1x384xf32>
    %c29_87 = arith.constant 29 : index
    %c0_88 = arith.constant 0 : index
    %119 = vector.load %arg6[%c29_87, %c0_88] : memref<32x384xf32, #tpu.memory_space<vmem>>, vector<1x384xf32>
    tpu.vector_store %arg6[%c29_87, %c0_88], %118 {strides = array<i32>} : memref<32x384xf32, #tpu.memory_space<vmem>>, vector<1x384xf32>,
    %c23_89 = arith.constant 23 : index
    %120 = memref.load %arg0[%c23_89] : memref<32xi32, #tpu.memory_space<smem>>
    %121 = arith.index_cast %120 : i32 to index
    %c0_90 = arith.constant 0 : index
    %122 = vector.load %arg1[%121, %c0_90] : memref<32x384xf32, #tpu.memory_space<vmem>>, vector<1x384xf32>
    %c30_91 = arith.constant 30 : index
    %c0_92 = arith.constant 0 : index
    %123 = vector.load %arg6[%c30_91, %c0_92] : memref<32x384xf32, #tpu.memory_space<vmem>>, vector<1x384xf32>
    tpu.vector_store %arg6[%c30_91, %c0_92], %122 {strides = array<i32>} : memref<32x384xf32, #tpu.memory_space<vmem>>, vector<1x384xf32>,
    %c31 = arith.constant 31 : index
    %124 = memref.load %arg0[%c31] : memref<32xi32, #tpu.memory_space<smem>>
    %125 = arith.index_cast %124 : i32 to index
    %c0_93 = arith.constant 0 : index
    %126 = vector.load %arg1[%125, %c0_93] : memref<32x384xf32, #tpu.memory_space<vmem>>, vector<1x384xf32>
    %c31_94 = arith.constant 31 : index
    %c0_95 = arith.constant 0 : index
    %127 = vector.load %arg6[%c31_94, %c0_95] : memref<32x384xf32, #tpu.memory_space<vmem>>, vector<1x384xf32>
    tpu.vector_store %arg6[%c31_94, %c0_95], %126 {strides = array<i32>} : memref<32x384xf32, #tpu.memory_space<vmem>>, vector<1x384xf32>,
    %c0_96 = arith.constant 0 : index
    %c0_97 = arith.constant 0 : index
    %128 = vector.load %arg2[%c0_96, %c0_97] : memref<128x384xbf16, #tpu.memory_space<vmem>>, vector<128x384xbf16>
    %c0_98 = arith.constant 0 : index
    %c0_99 = arith.constant 0 : index
    %129 = vector.load %arg4[%c0_98, %c0_99] : memref<2x128xf32, #tpu.memory_space<vmem>>, vector<1x128xf32>
    %c1_100 = arith.constant 1 : index
    %c0_101 = arith.constant 0 : index
    %130 = vector.load %arg4[%c1_100, %c0_101] : memref<2x128xf32, #tpu.memory_space<vmem>>, vector<1x8xf32>
    %131 = vector.shape_cast %130 : vector<1x8xf32> to vector<1x8xf32>
    %132 = vector.broadcast %131 : vector<1x8xf32> to vector<4x8xf32>
    %cst = arith.constant 0.000000e+00 : f32
    %133 = vector.broadcast %cst : f32 to vector<4x128xf32>
    %134 = arith.truncf %133 : vector<4x128xf32> to vector<4x128xbf16>
    %c0_102 = arith.constant 0 : index
    %c0_103 = arith.constant 0 : index
    %135 = vector.load %arg6[%c0_102, %c0_103] : memref<32x384xf32, #tpu.memory_space<vmem>>, vector<4x384xf32>
    %cst_104 = arith.constant dense<0.000000e+00> : vector<4x384xf32>
    %136 = tpu.matmul %134, %128, %cst_104 {dimension_numbers = #tpu.dot_dimension_numbers<[1], [0], [0], [1], [0, 0, 1, 1], [], []>} : vector<4x128xbf16>, vector<128x384xbf16>, vector<4x384xf32> -> vector<4x384xf32>
    %137 = vector.extract_strided_slice %135 {offsets = [0, 0], sizes = [4, 256], strides = [1, 1]} : vector<4x384xf32> to vector<4x256xf32>
    %138 = vector.extract_strided_slice %136 {offsets = [0, 0], sizes = [4, 256], strides = [1, 1]} : vector<4x384xf32> to vector<4x256xf32>
    %139 = arith.addf %137, %138 : vector<4x256xf32>
    %140 = arith.negf %139 : vector<4x256xf32>
    %141 = math.exp %140 : vector<4x256xf32>
    %cst_105 = arith.constant 1.000000e+00 : f32
    %142 = vector.broadcast %cst_105 : f32 to vector<4x256xf32>
    %143 = arith.addf %142, %141 : vector<4x256xf32>
    %144 = arith.divf %142, %143 : vector<4x256xf32>
    %145 = vector.extract_strided_slice %144 {offsets = [0, 0], sizes = [4, 128], strides = [1, 1]} : vector<4x256xf32> to vector<4x128xf32>
    %146 = vector.extract_strided_slice %144 {offsets = [0, 128], sizes = [4, 128], strides = [1, 1]} : vector<4x256xf32> to vector<4x128xf32>
    %147 = vector.extract_strided_slice %135 {offsets = [0, 256], sizes = [4, 128], strides = [1, 1]} : vector<4x384xf32> to vector<4x128xf32>
    %148 = vector.extract_strided_slice %136 {offsets = [0, 256], sizes = [4, 128], strides = [1, 1]} : vector<4x384xf32> to vector<4x128xf32>
    %149 = vector.broadcast %129 : vector<1x128xf32> to vector<4x128xf32>
    %150 = arith.addf %148, %149 : vector<4x128xf32>
    %151 = arith.mulf %145, %150 : vector<4x128xf32>
    %152 = arith.addf %147, %151 : vector<4x128xf32>
    %153 = math.tanh %152 : vector<4x128xf32>
    %cst_106 = arith.constant 1.000000e+00 : f32
    %154 = vector.broadcast %cst_106 : f32 to vector<4x128xf32>
    %155 = arith.subf %154, %146 : vector<4x128xf32>
    %156 = arith.mulf %155, %153 : vector<4x128xf32>
    %157 = arith.mulf %146, %133 : vector<4x128xf32>
    %158 = arith.addf %156, %157 : vector<4x128xf32>
    %159 = arith.truncf %158 : vector<4x128xf32> to vector<4x128xbf16>
    %c0_107 = arith.constant 0 : index
    %c0_108 = arith.constant 0 : index
    %c0_109 = arith.constant 0 : index
    %160 = vector.load %arg3[%c0_107, %c0_108, %c0_109] : memref<8x128x8xbf16, #tpu.memory_space<vmem>>, vector<1x128x8xbf16>
    %161 = vector.shape_cast %160 : vector<1x128x8xbf16> to vector<128x8xbf16>
    %cst_110 = arith.constant dense<0.000000e+00> : vector<4x8xf32>
    %162 = tpu.matmul %159, %161, %cst_110 {dimension_numbers = #tpu.dot_dimension_numbers<[1], [0], [0], [1], [0, 0, 1, 1], [], []>} : vector<4x128xbf16>, vector<128x8xbf16>, vector<4x8xf32> -> vector<4x8xf32>
    %163 = arith.addf %132, %162 : vector<4x8xf32>
    %c4_111 = arith.constant 4 : index
    %c0_112 = arith.constant 0 : index
    %164 = vector.load %arg6[%c4_111, %c0_112] : memref<32x384xf32, #tpu.memory_space<vmem>>, vector<4x384xf32>
    %cst_113 = arith.constant dense<0.000000e+00> : vector<4x384xf32>
    %165 = tpu.matmul %159, %128, %cst_113 {dimension_numbers = #tpu.dot_dimension_numbers<[1], [0], [0], [1], [0, 0, 1, 1], [], []>} : vector<4x128xbf16>, vector<128x384xbf16>, vector<4x384xf32> -> vector<4x384xf32>
    %166 = vector.extract_strided_slice %164 {offsets = [0, 0], sizes = [4, 256], strides = [1, 1]} : vector<4x384xf32> to vector<4x256xf32>
    %167 = vector.extract_strided_slice %165 {offsets = [0, 0], sizes = [4, 256], strides = [1, 1]} : vector<4x384xf32> to vector<4x256xf32>
    %168 = arith.addf %166, %167 : vector<4x256xf32>
    %169 = arith.negf %168 : vector<4x256xf32>
    %170 = math.exp %169 : vector<4x256xf32>
    %cst_114 = arith.constant 1.000000e+00 : f32
    %171 = vector.broadcast %cst_114 : f32 to vector<4x256xf32>
    %172 = arith.addf %171, %170 : vector<4x256xf32>
    %173 = arith.divf %171, %172 : vector<4x256xf32>
    %174 = vector.extract_strided_slice %173 {offsets = [0, 0], sizes = [4, 128], strides = [1, 1]} : vector<4x256xf32> to vector<4x128xf32>
    %175 = vector.extract_strided_slice %173 {offsets = [0, 128], sizes = [4, 128], strides = [1, 1]} : vector<4x256xf32> to vector<4x128xf32>
    %176 = vector.extract_strided_slice %164 {offsets = [0, 256], sizes = [4, 128], strides = [1, 1]} : vector<4x384xf32> to vector<4x128xf32>
    %177 = vector.extract_strided_slice %165 {offsets = [0, 256], sizes = [4, 128], strides = [1, 1]} : vector<4x384xf32> to vector<4x128xf32>
    %178 = vector.broadcast %129 : vector<1x128xf32> to vector<4x128xf32>
    %179 = arith.addf %177, %178 : vector<4x128xf32>
    %180 = arith.mulf %174, %179 : vector<4x128xf32>
    %181 = arith.addf %176, %180 : vector<4x128xf32>
    %182 = math.tanh %181 : vector<4x128xf32>
    %cst_115 = arith.constant 1.000000e+00 : f32
    %183 = vector.broadcast %cst_115 : f32 to vector<4x128xf32>
    %184 = arith.subf %183, %175 : vector<4x128xf32>
    %185 = arith.mulf %184, %182 : vector<4x128xf32>
    %186 = arith.mulf %175, %158 : vector<4x128xf32>
    %187 = arith.addf %185, %186 : vector<4x128xf32>
    %188 = arith.truncf %187 : vector<4x128xf32> to vector<4x128xbf16>
    %c1_116 = arith.constant 1 : index
    %c0_117 = arith.constant 0 : index
    %c0_118 = arith.constant 0 : index
    %189 = vector.load %arg3[%c1_116, %c0_117, %c0_118] : memref<8x128x8xbf16, #tpu.memory_space<vmem>>, vector<1x128x8xbf16>
    %190 = vector.shape_cast %189 : vector<1x128x8xbf16> to vector<128x8xbf16>
    %cst_119 = arith.constant dense<0.000000e+00> : vector<4x8xf32>
    %191 = tpu.matmul %188, %190, %cst_119 {dimension_numbers = #tpu.dot_dimension_numbers<[1], [0], [0], [1], [0, 0, 1, 1], [], []>} : vector<4x128xbf16>, vector<128x8xbf16>, vector<4x8xf32> -> vector<4x8xf32>
    %192 = arith.addf %163, %191 : vector<4x8xf32>
    %c8_120 = arith.constant 8 : index
    %c0_121 = arith.constant 0 : index
    %193 = vector.load %arg6[%c8_120, %c0_121] : memref<32x384xf32, #tpu.memory_space<vmem>>, vector<4x384xf32>
    %cst_122 = arith.constant dense<0.000000e+00> : vector<4x384xf32>
    %194 = tpu.matmul %188, %128, %cst_122 {dimension_numbers = #tpu.dot_dimension_numbers<[1], [0], [0], [1], [0, 0, 1, 1], [], []>} : vector<4x128xbf16>, vector<128x384xbf16>, vector<4x384xf32> -> vector<4x384xf32>
    %195 = vector.extract_strided_slice %193 {offsets = [0, 0], sizes = [4, 256], strides = [1, 1]} : vector<4x384xf32> to vector<4x256xf32>
    %196 = vector.extract_strided_slice %194 {offsets = [0, 0], sizes = [4, 256], strides = [1, 1]} : vector<4x384xf32> to vector<4x256xf32>
    %197 = arith.addf %195, %196 : vector<4x256xf32>
    %198 = arith.negf %197 : vector<4x256xf32>
    %199 = math.exp %198 : vector<4x256xf32>
    %cst_123 = arith.constant 1.000000e+00 : f32
    %200 = vector.broadcast %cst_123 : f32 to vector<4x256xf32>
    %201 = arith.addf %200, %199 : vector<4x256xf32>
    %202 = arith.divf %200, %201 : vector<4x256xf32>
    %203 = vector.extract_strided_slice %202 {offsets = [0, 0], sizes = [4, 128], strides = [1, 1]} : vector<4x256xf32> to vector<4x128xf32>
    %204 = vector.extract_strided_slice %202 {offsets = [0, 128], sizes = [4, 128], strides = [1, 1]} : vector<4x256xf32> to vector<4x128xf32>
    %205 = vector.extract_strided_slice %193 {offsets = [0, 256], sizes = [4, 128], strides = [1, 1]} : vector<4x384xf32> to vector<4x128xf32>
    %206 = vector.extract_strided_slice %194 {offsets = [0, 256], sizes = [4, 128], strides = [1, 1]} : vector<4x384xf32> to vector<4x128xf32>
    %207 = vector.broadcast %129 : vector<1x128xf32> to vector<4x128xf32>
    %208 = arith.addf %206, %207 : vector<4x128xf32>
    %209 = arith.mulf %203, %208 : vector<4x128xf32>
    %210 = arith.addf %205, %209 : vector<4x128xf32>
    %211 = math.tanh %210 : vector<4x128xf32>
    %cst_124 = arith.constant 1.000000e+00 : f32
    %212 = vector.broadcast %cst_124 : f32 to vector<4x128xf32>
    %213 = arith.subf %212, %204 : vector<4x128xf32>
    %214 = arith.mulf %213, %211 : vector<4x128xf32>
    %215 = arith.mulf %204, %187 : vector<4x128xf32>
    %216 = arith.addf %214, %215 : vector<4x128xf32>
    %217 = arith.truncf %216 : vector<4x128xf32> to vector<4x128xbf16>
    %c2_125 = arith.constant 2 : index
    %c0_126 = arith.constant 0 : index
    %c0_127 = arith.constant 0 : index
    %218 = vector.load %arg3[%c2_125, %c0_126, %c0_127] : memref<8x128x8xbf16, #tpu.memory_space<vmem>>, vector<1x128x8xbf16>
    %219 = vector.shape_cast %218 : vector<1x128x8xbf16> to vector<128x8xbf16>
    %cst_128 = arith.constant dense<0.000000e+00> : vector<4x8xf32>
    %220 = tpu.matmul %217, %219, %cst_128 {dimension_numbers = #tpu.dot_dimension_numbers<[1], [0], [0], [1], [0, 0, 1, 1], [], []>} : vector<4x128xbf16>, vector<128x8xbf16>, vector<4x8xf32> -> vector<4x8xf32>
    %221 = arith.addf %192, %220 : vector<4x8xf32>
    %c12_129 = arith.constant 12 : index
    %c0_130 = arith.constant 0 : index
    %222 = vector.load %arg6[%c12_129, %c0_130] : memref<32x384xf32, #tpu.memory_space<vmem>>, vector<4x384xf32>
    %cst_131 = arith.constant dense<0.000000e+00> : vector<4x384xf32>
    %223 = tpu.matmul %217, %128, %cst_131 {dimension_numbers = #tpu.dot_dimension_numbers<[1], [0], [0], [1], [0, 0, 1, 1], [], []>} : vector<4x128xbf16>, vector<128x384xbf16>, vector<4x384xf32> -> vector<4x384xf32>
    %224 = vector.extract_strided_slice %222 {offsets = [0, 0], sizes = [4, 256], strides = [1, 1]} : vector<4x384xf32> to vector<4x256xf32>
    %225 = vector.extract_strided_slice %223 {offsets = [0, 0], sizes = [4, 256], strides = [1, 1]} : vector<4x384xf32> to vector<4x256xf32>
    %226 = arith.addf %224, %225 : vector<4x256xf32>
    %227 = arith.negf %226 : vector<4x256xf32>
    %228 = math.exp %227 : vector<4x256xf32>
    %cst_132 = arith.constant 1.000000e+00 : f32
    %229 = vector.broadcast %cst_132 : f32 to vector<4x256xf32>
    %230 = arith.addf %229, %228 : vector<4x256xf32>
    %231 = arith.divf %229, %230 : vector<4x256xf32>
    %232 = vector.extract_strided_slice %231 {offsets = [0, 0], sizes = [4, 128], strides = [1, 1]} : vector<4x256xf32> to vector<4x128xf32>
    %233 = vector.extract_strided_slice %231 {offsets = [0, 128], sizes = [4, 128], strides = [1, 1]} : vector<4x256xf32> to vector<4x128xf32>
    %234 = vector.extract_strided_slice %222 {offsets = [0, 256], sizes = [4, 128], strides = [1, 1]} : vector<4x384xf32> to vector<4x128xf32>
    %235 = vector.extract_strided_slice %223 {offsets = [0, 256], sizes = [4, 128], strides = [1, 1]} : vector<4x384xf32> to vector<4x128xf32>
    %236 = vector.broadcast %129 : vector<1x128xf32> to vector<4x128xf32>
    %237 = arith.addf %235, %236 : vector<4x128xf32>
    %238 = arith.mulf %232, %237 : vector<4x128xf32>
    %239 = arith.addf %234, %238 : vector<4x128xf32>
    %240 = math.tanh %239 : vector<4x128xf32>
    %cst_133 = arith.constant 1.000000e+00 : f32
    %241 = vector.broadcast %cst_133 : f32 to vector<4x128xf32>
    %242 = arith.subf %241, %233 : vector<4x128xf32>
    %243 = arith.mulf %242, %240 : vector<4x128xf32>
    %244 = arith.mulf %233, %216 : vector<4x128xf32>
    %245 = arith.addf %243, %244 : vector<4x128xf32>
    %246 = arith.truncf %245 : vector<4x128xf32> to vector<4x128xbf16>
    %c3_134 = arith.constant 3 : index
    %c0_135 = arith.constant 0 : index
    %c0_136 = arith.constant 0 : index
    %247 = vector.load %arg3[%c3_134, %c0_135, %c0_136] : memref<8x128x8xbf16, #tpu.memory_space<vmem>>, vector<1x128x8xbf16>
    %248 = vector.shape_cast %247 : vector<1x128x8xbf16> to vector<128x8xbf16>
    %cst_137 = arith.constant dense<0.000000e+00> : vector<4x8xf32>
    %249 = tpu.matmul %246, %248, %cst_137 {dimension_numbers = #tpu.dot_dimension_numbers<[1], [0], [0], [1], [0, 0, 1, 1], [], []>} : vector<4x128xbf16>, vector<128x8xbf16>, vector<4x8xf32> -> vector<4x8xf32>
    %250 = arith.addf %221, %249 : vector<4x8xf32>
    %c16_138 = arith.constant 16 : index
    %c0_139 = arith.constant 0 : index
    %251 = vector.load %arg6[%c16_138, %c0_139] : memref<32x384xf32, #tpu.memory_space<vmem>>, vector<4x384xf32>
    %cst_140 = arith.constant dense<0.000000e+00> : vector<4x384xf32>
    %252 = tpu.matmul %246, %128, %cst_140 {dimension_numbers = #tpu.dot_dimension_numbers<[1], [0], [0], [1], [0, 0, 1, 1], [], []>} : vector<4x128xbf16>, vector<128x384xbf16>, vector<4x384xf32> -> vector<4x384xf32>
    %253 = vector.extract_strided_slice %251 {offsets = [0, 0], sizes = [4, 256], strides = [1, 1]} : vector<4x384xf32> to vector<4x256xf32>
    %254 = vector.extract_strided_slice %252 {offsets = [0, 0], sizes = [4, 256], strides = [1, 1]} : vector<4x384xf32> to vector<4x256xf32>
    %255 = arith.addf %253, %254 : vector<4x256xf32>
    %256 = arith.negf %255 : vector<4x256xf32>
    %257 = math.exp %256 : vector<4x256xf32>
    %cst_141 = arith.constant 1.000000e+00 : f32
    %258 = vector.broadcast %cst_141 : f32 to vector<4x256xf32>
    %259 = arith.addf %258, %257 : vector<4x256xf32>
    %260 = arith.divf %258, %259 : vector<4x256xf32>
    %261 = vector.extract_strided_slice %260 {offsets = [0, 0], sizes = [4, 128], strides = [1, 1]} : vector<4x256xf32> to vector<4x128xf32>
    %262 = vector.extract_strided_slice %260 {offsets = [0, 128], sizes = [4, 128], strides = [1, 1]} : vector<4x256xf32> to vector<4x128xf32>
    %263 = vector.extract_strided_slice %251 {offsets = [0, 256], sizes = [4, 128], strides = [1, 1]} : vector<4x384xf32> to vector<4x128xf32>
    %264 = vector.extract_strided_slice %252 {offsets = [0, 256], sizes = [4, 128], strides = [1, 1]} : vector<4x384xf32> to vector<4x128xf32>
    %265 = vector.broadcast %129 : vector<1x128xf32> to vector<4x128xf32>
    %266 = arith.addf %264, %265 : vector<4x128xf32>
    %267 = arith.mulf %261, %266 : vector<4x128xf32>
    %268 = arith.addf %263, %267 : vector<4x128xf32>
    %269 = math.tanh %268 : vector<4x128xf32>
    %cst_142 = arith.constant 1.000000e+00 : f32
    %270 = vector.broadcast %cst_142 : f32 to vector<4x128xf32>
    %271 = arith.subf %270, %262 : vector<4x128xf32>
    %272 = arith.mulf %271, %269 : vector<4x128xf32>
    %273 = arith.mulf %262, %245 : vector<4x128xf32>
    %274 = arith.addf %272, %273 : vector<4x128xf32>
    %275 = arith.truncf %274 : vector<4x128xf32> to vector<4x128xbf16>
    %c4_143 = arith.constant 4 : index
    %c0_144 = arith.constant 0 : index
    %c0_145 = arith.constant 0 : index
    %276 = vector.load %arg3[%c4_143, %c0_144, %c0_145] : memref<8x128x8xbf16, #tpu.memory_space<vmem>>, vector<1x128x8xbf16>
    %277 = vector.shape_cast %276 : vector<1x128x8xbf16> to vector<128x8xbf16>
    %cst_146 = arith.constant dense<0.000000e+00> : vector<4x8xf32>
    %278 = tpu.matmul %275, %277, %cst_146 {dimension_numbers = #tpu.dot_dimension_numbers<[1], [0], [0], [1], [0, 0, 1, 1], [], []>} : vector<4x128xbf16>, vector<128x8xbf16>, vector<4x8xf32> -> vector<4x8xf32>
    %279 = arith.addf %250, %278 : vector<4x8xf32>
    %c20_147 = arith.constant 20 : index
    %c0_148 = arith.constant 0 : index
    %280 = vector.load %arg6[%c20_147, %c0_148] : memref<32x384xf32, #tpu.memory_space<vmem>>, vector<4x384xf32>
    %cst_149 = arith.constant dense<0.000000e+00> : vector<4x384xf32>
    %281 = tpu.matmul %275, %128, %cst_149 {dimension_numbers = #tpu.dot_dimension_numbers<[1], [0], [0], [1], [0, 0, 1, 1], [], []>} : vector<4x128xbf16>, vector<128x384xbf16>, vector<4x384xf32> -> vector<4x384xf32>
    %282 = vector.extract_strided_slice %280 {offsets = [0, 0], sizes = [4, 256], strides = [1, 1]} : vector<4x384xf32> to vector<4x256xf32>
    %283 = vector.extract_strided_slice %281 {offsets = [0, 0], sizes = [4, 256], strides = [1, 1]} : vector<4x384xf32> to vector<4x256xf32>
    %284 = arith.addf %282, %283 : vector<4x256xf32>
    %285 = arith.negf %284 : vector<4x256xf32>
    %286 = math.exp %285 : vector<4x256xf32>
    %cst_150 = arith.constant 1.000000e+00 : f32
    %287 = vector.broadcast %cst_150 : f32 to vector<4x256xf32>
    %288 = arith.addf %287, %286 : vector<4x256xf32>
    %289 = arith.divf %287, %288 : vector<4x256xf32>
    %290 = vector.extract_strided_slice %289 {offsets = [0, 0], sizes = [4, 128], strides = [1, 1]} : vector<4x256xf32> to vector<4x128xf32>
    %291 = vector.extract_strided_slice %289 {offsets = [0, 128], sizes = [4, 128], strides = [1, 1]} : vector<4x256xf32> to vector<4x128xf32>
    %292 = vector.extract_strided_slice %280 {offsets = [0, 256], sizes = [4, 128], strides = [1, 1]} : vector<4x384xf32> to vector<4x128xf32>
    %293 = vector.extract_strided_slice %281 {offsets = [0, 256], sizes = [4, 128], strides = [1, 1]} : vector<4x384xf32> to vector<4x128xf32>
    %294 = vector.broadcast %129 : vector<1x128xf32> to vector<4x128xf32>
    %295 = arith.addf %293, %294 : vector<4x128xf32>
    %296 = arith.mulf %290, %295 : vector<4x128xf32>
    %297 = arith.addf %292, %296 : vector<4x128xf32>
    %298 = math.tanh %297 : vector<4x128xf32>
    %cst_151 = arith.constant 1.000000e+00 : f32
    %299 = vector.broadcast %cst_151 : f32 to vector<4x128xf32>
    %300 = arith.subf %299, %291 : vector<4x128xf32>
    %301 = arith.mulf %300, %298 : vector<4x128xf32>
    %302 = arith.mulf %291, %274 : vector<4x128xf32>
    %303 = arith.addf %301, %302 : vector<4x128xf32>
    %304 = arith.truncf %303 : vector<4x128xf32> to vector<4x128xbf16>
    %c5_152 = arith.constant 5 : index
    %c0_153 = arith.constant 0 : index
    %c0_154 = arith.constant 0 : index
    %305 = vector.load %arg3[%c5_152, %c0_153, %c0_154] : memref<8x128x8xbf16, #tpu.memory_space<vmem>>, vector<1x128x8xbf16>
    %306 = vector.shape_cast %305 : vector<1x128x8xbf16> to vector<128x8xbf16>
    %cst_155 = arith.constant dense<0.000000e+00> : vector<4x8xf32>
    %307 = tpu.matmul %304, %306, %cst_155 {dimension_numbers = #tpu.dot_dimension_numbers<[1], [0], [0], [1], [0, 0, 1, 1], [], []>} : vector<4x128xbf16>, vector<128x8xbf16>, vector<4x8xf32> -> vector<4x8xf32>
    %308 = arith.addf %279, %307 : vector<4x8xf32>
    %c24_156 = arith.constant 24 : index
    %c0_157 = arith.constant 0 : index
    %309 = vector.load %arg6[%c24_156, %c0_157] : memref<32x384xf32, #tpu.memory_space<vmem>>, vector<4x384xf32>
    %cst_158 = arith.constant dense<0.000000e+00> : vector<4x384xf32>
    %310 = tpu.matmul %304, %128, %cst_158 {dimension_numbers = #tpu.dot_dimension_numbers<[1], [0], [0], [1], [0, 0, 1, 1], [], []>} : vector<4x128xbf16>, vector<128x384xbf16>, vector<4x384xf32> -> vector<4x384xf32>
    %311 = vector.extract_strided_slice %309 {offsets = [0, 0], sizes = [4, 256], strides = [1, 1]} : vector<4x384xf32> to vector<4x256xf32>
    %312 = vector.extract_strided_slice %310 {offsets = [0, 0], sizes = [4, 256], strides = [1, 1]} : vector<4x384xf32> to vector<4x256xf32>
    %313 = arith.addf %311, %312 : vector<4x256xf32>
    %314 = arith.negf %313 : vector<4x256xf32>
    %315 = math.exp %314 : vector<4x256xf32>
    %cst_159 = arith.constant 1.000000e+00 : f32
    %316 = vector.broadcast %cst_159 : f32 to vector<4x256xf32>
    %317 = arith.addf %316, %315 : vector<4x256xf32>
    %318 = arith.divf %316, %317 : vector<4x256xf32>
    %319 = vector.extract_strided_slice %318 {offsets = [0, 0], sizes = [4, 128], strides = [1, 1]} : vector<4x256xf32> to vector<4x128xf32>
    %320 = vector.extract_strided_slice %318 {offsets = [0, 128], sizes = [4, 128], strides = [1, 1]} : vector<4x256xf32> to vector<4x128xf32>
    %321 = vector.extract_strided_slice %309 {offsets = [0, 256], sizes = [4, 128], strides = [1, 1]} : vector<4x384xf32> to vector<4x128xf32>
    %322 = vector.extract_strided_slice %310 {offsets = [0, 256], sizes = [4, 128], strides = [1, 1]} : vector<4x384xf32> to vector<4x128xf32>
    %323 = vector.broadcast %129 : vector<1x128xf32> to vector<4x128xf32>
    %324 = arith.addf %322, %323 : vector<4x128xf32>
    %325 = arith.mulf %319, %324 : vector<4x128xf32>
    %326 = arith.addf %321, %325 : vector<4x128xf32>
    %327 = math.tanh %326 : vector<4x128xf32>
    %cst_160 = arith.constant 1.000000e+00 : f32
    %328 = vector.broadcast %cst_160 : f32 to vector<4x128xf32>
    %329 = arith.subf %328, %320 : vector<4x128xf32>
    %330 = arith.mulf %329, %327 : vector<4x128xf32>
    %331 = arith.mulf %320, %303 : vector<4x128xf32>
    %332 = arith.addf %330, %331 : vector<4x128xf32>
    %333 = arith.truncf %332 : vector<4x128xf32> to vector<4x128xbf16>
    %c6_161 = arith.constant 6 : index
    %c0_162 = arith.constant 0 : index
    %c0_163 = arith.constant 0 : index
    %334 = vector.load %arg3[%c6_161, %c0_162, %c0_163] : memref<8x128x8xbf16, #tpu.memory_space<vmem>>, vector<1x128x8xbf16>
    %335 = vector.shape_cast %334 : vector<1x128x8xbf16> to vector<128x8xbf16>
    %cst_164 = arith.constant dense<0.000000e+00> : vector<4x8xf32>
    %336 = tpu.matmul %333, %335, %cst_164 {dimension_numbers = #tpu.dot_dimension_numbers<[1], [0], [0], [1], [0, 0, 1, 1], [], []>} : vector<4x128xbf16>, vector<128x8xbf16>, vector<4x8xf32> -> vector<4x8xf32>
    %337 = arith.addf %308, %336 : vector<4x8xf32>
    %c28_165 = arith.constant 28 : index
    %c0_166 = arith.constant 0 : index
    %338 = vector.load %arg6[%c28_165, %c0_166] : memref<32x384xf32, #tpu.memory_space<vmem>>, vector<4x384xf32>
    %cst_167 = arith.constant dense<0.000000e+00> : vector<4x384xf32>
    %339 = tpu.matmul %333, %128, %cst_167 {dimension_numbers = #tpu.dot_dimension_numbers<[1], [0], [0], [1], [0, 0, 1, 1], [], []>} : vector<4x128xbf16>, vector<128x384xbf16>, vector<4x384xf32> -> vector<4x384xf32>
    %340 = vector.extract_strided_slice %338 {offsets = [0, 0], sizes = [4, 256], strides = [1, 1]} : vector<4x384xf32> to vector<4x256xf32>
    %341 = vector.extract_strided_slice %339 {offsets = [0, 0], sizes = [4, 256], strides = [1, 1]} : vector<4x384xf32> to vector<4x256xf32>
    %342 = arith.addf %340, %341 : vector<4x256xf32>
    %343 = arith.negf %342 : vector<4x256xf32>
    %344 = math.exp %343 : vector<4x256xf32>
    %cst_168 = arith.constant 1.000000e+00 : f32
    %345 = vector.broadcast %cst_168 : f32 to vector<4x256xf32>
    %346 = arith.addf %345, %344 : vector<4x256xf32>
    %347 = arith.divf %345, %346 : vector<4x256xf32>
    %348 = vector.extract_strided_slice %347 {offsets = [0, 0], sizes = [4, 128], strides = [1, 1]} : vector<4x256xf32> to vector<4x128xf32>
    %349 = vector.extract_strided_slice %347 {offsets = [0, 128], sizes = [4, 128], strides = [1, 1]} : vector<4x256xf32> to vector<4x128xf32>
    %350 = vector.extract_strided_slice %338 {offsets = [0, 256], sizes = [4, 128], strides = [1, 1]} : vector<4x384xf32> to vector<4x128xf32>
    %351 = vector.extract_strided_slice %339 {offsets = [0, 256], sizes = [4, 128], strides = [1, 1]} : vector<4x384xf32> to vector<4x128xf32>
    %352 = vector.broadcast %129 : vector<1x128xf32> to vector<4x128xf32>
    %353 = arith.addf %351, %352 : vector<4x128xf32>
    %354 = arith.mulf %348, %353 : vector<4x128xf32>
    %355 = arith.addf %350, %354 : vector<4x128xf32>
    %356 = math.tanh %355 : vector<4x128xf32>
    %cst_169 = arith.constant 1.000000e+00 : f32
    %357 = vector.broadcast %cst_169 : f32 to vector<4x128xf32>
    %358 = arith.subf %357, %349 : vector<4x128xf32>
    %359 = arith.mulf %358, %356 : vector<4x128xf32>
    %360 = arith.mulf %349, %332 : vector<4x128xf32>
    %361 = arith.addf %359, %360 : vector<4x128xf32>
    %362 = arith.truncf %361 : vector<4x128xf32> to vector<4x128xbf16>
    %c7_170 = arith.constant 7 : index
    %c0_171 = arith.constant 0 : index
    %c0_172 = arith.constant 0 : index
    %363 = vector.load %arg3[%c7_170, %c0_171, %c0_172] : memref<8x128x8xbf16, #tpu.memory_space<vmem>>, vector<1x128x8xbf16>
    %364 = vector.shape_cast %363 : vector<1x128x8xbf16> to vector<128x8xbf16>
    %cst_173 = arith.constant dense<0.000000e+00> : vector<4x8xf32>
    %365 = tpu.matmul %362, %364, %cst_173 {dimension_numbers = #tpu.dot_dimension_numbers<[1], [0], [0], [1], [0, 0, 1, 1], [], []>} : vector<4x128xbf16>, vector<128x8xbf16>, vector<4x8xf32> -> vector<4x8xf32>
    %366 = arith.addf %337, %365 : vector<4x8xf32>
    %c0_174 = arith.constant 0 : index
    %c0_175 = arith.constant 0 : index
    %367 = vector.load %arg5[%c0_174, %c0_175] : memref<4x8xf32, #tpu.memory_space<vmem>>, vector<4x8xf32>
    tpu.vector_store %arg5[%c0_174, %c0_175], %366 {strides = array<i32>} : memref<4x8xf32, #tpu.memory_space<vmem>>, vector<4x8xf32>,
    return
  }
}

</mosaic_0001>

<bundles_post_ra>
// kernel: gru_net_forward.1
= control target key start
LH: loop header
LB: loop body
LE: loop exit
PB: predicated region body
PF: predicated region fallthrough
CT: control target
= control target key end

     0   :  { %10 = vsyncpa [#allocation5], 0  ;;  %s4611_s0 = inlined_call_operand.vmem [shape: s32[32], index: 0, kind: input, shape index: {}]   ;;  %s4612_s1 = inlined_call_operand.vmem [shape: f32[32,384], index: 1, kind: input, shape index: {}]   ;;  %s4613_s2 = inlined_call_operand.vmem [shape: bf16[128,384], index: 2, kind: input, shape index: {}]   ;;  %s4614_s3 = inlined_call_operand.vmem [shape: bf16[8,128,8], index: 3, kind: input, shape index: {}]   ;;  %s4615_s4 = inlined_call_operand.vmem [shape: f32[2,128], index: 4, kind: input, shape index: {}]   ;;  %s4616_s5 = inlined_call_operand.hbm [shape: f32[4,8], index: 5, kind: output, shape index: {}]  }
   0x1   :  { %11 = vsyncpa [#allocation4], 0  ;;  %s18_s20 = sshll.u32 %s4611_s0, 4  ;;  %s19_s20 = int_to_ptr.vmem [resolvable:$true] %s18_s20 }
   0x2   :  { %s3493_s21 = scalar_lea.vmem %s19_s20, 16  ;;  %p3498_p1 = scmp.lt.s32.totalorder %s19_s20, %s19_s20 }
   0x3   :  { %p3494_p0 = scmp.ne.s32.totalorder %s19_s20, %s3493_s21  ;;  %p3499_p2 = scmp.lt.s32.totalorder %s3493_s21, %s3493_s21 }
   0x5   :  { %p3500_p3 = por %p3499_p2, %p3498_p1 }
   0x7   :  { %p3501_p4 = pnand %p3500_p3, %p3494_p0 }
   0x9   :  { %3504 = shalt.err (!%p3501_p4)
}
   0xa   :  { %s3531_s22 = smov [#allocation3]  }
   0xb   :  { %21 = dma.vmem_to_smem %s19_s20, 16, %s3531_s22, [#allocation5]  }
   0xc   :  { %3527 = dma.done.wait [#allocation5], 16  }
   0xd   :  { %3528 = vsyncadd [#allocation5], 4294967280 }
   0xe   :  { %33 = sfence }
   0xf   :  { %v3572_v0 = vld [vmem:[%s4613_s2 + $0x4] ss:$12 sps:$4 sm:$0xff]   ;;  %v3577_v1 = vld [vmem:[%s4613_s2] ss:$12 sps:$4 sm:$0xff]   ;;  %v3532_v2 = vmov 0   ;;  %v3533_v3 = vmov 0.0   ;;  %v45_v14 = vlaneseq }
  0x10   :  { %655 = vmatprep.mubr.bf16.mxu1 %v3532_v2  ;;  %2954 = vmatprep.subr.bf16.mxu0 %v3533_v3  ;;  %v3585_v4 = vld [vmem:[%s4613_s2 + $0x1c] ss:$12 sps:$4 sm:$0xff]   ;;  %vm3534_vm0 = vmmov 0   ;;  %v3593_v5 = vld [vmem:[%s4613_s2 + $0x18] ss:$12 sps:$4 sm:$0xff]   ;;  %s35_s13 = sld [smem:[#allocation3]] }
  0x11   :  { %623 = vmatprep.subr.bf16.mxu1 %v3572_v0  ;;  %2970 = vmatprep.mubr.msk.bf16.mxu0 %vm3534_vm0, %v3533_v3  ;;  %v3599_v6 = vld [vmem:[%s4613_s2 + $0x34] ss:$12 sps:$4 sm:$0xff]   ;;  %v3605_v7 = vld [vmem:[%s4613_s2 + $0x30] ss:$12 sps:$4 sm:$0xff]   ;;  %v3611_v8 = vld [vmem:[%s4613_s2 + $0x4c] ss:$12 sps:$4 sm:$0xff]  }
  0x12   :  { %624 = vmatpush1.bf16.msra.mxu1 %v3577_v1  ;;  %v3616_v9 = vld [vmem:[%s4613_s2 + $0x48] ss:$12 sps:$4 sm:$0xff]   ;;  %s2510_s14 = sld [smem:[#allocation3 + $0x8]]  ;;  %v3623_v10 = vld [vmem:[%s4613_s2 + $0x64] ss:$12 sps:$4 sm:$0xff]   ;;  %vm3658_vm1 = vcmp.lt.s32.totalorder %v45_v14, 384 }
  0x13   :  { %625 = vmatprep.subr.bf16.mxu1 %v3585_v4  ;;  %s3625_s17 = sld [smem:[#allocation3 + $0x10]]  ;;  %v3630_v11 = vld [vmem:[%s4613_s2 + $0x60] ss:$12 sps:$4 sm:$0xff]   ;;  %v3636_v12 = vld [vmem:[%s4613_s2 + $0x7c] ss:$12 sps:$4 sm:$0xff]   ;;  %v3322_v34 = vld [vmem:[%s4614_s3 + $0x10] sm:$0xff]  }
  0x14   :  { %s3639_s22 = sld [smem:[#allocation3 + $0x18]]  ;;  %v3644_v13 = vld [vmem:[%s4613_s2 + $0x78] ss:$12 sps:$4 sm:$0xff]   ;;  %v3649_v15 = vld [vmem:[%s4613_s2 + $0x94] ss:$12 sps:$4 sm:$0xff]   ;;  %v3321_v33 = vld [vmem:[%s4614_s3 + $0x8] sm:$0xff]  }
  0x15   :  { %v3656_v16 = vld [vmem:[%s4613_s2 + $0x90] ss:$12 sps:$4 sm:$0xff]   ;;  %v3666_v18 = vld [vmem:[%s4613_s2 + $0xac] ss:$12 sps:$4 sm:$0xff]   ;;  %v3683_v21 = vld [vmem:[%s4613_s2 + $0xa8] ss:$12 sps:$4 sm:$0xff]  }
  0x16   :  { %626 = vmatpush1.bf16.msra.mxu1 %v3593_v5  ;;  %s36_s26 = sshra.s32 %s35_s13, 3  ;;  %s39_s27 = sand.u32 7, %s35_s13  ;;  %v3699_v23 = vld [vmem:[%s4613_s2 + $0x8] ss:$12 sps:$4 sm:$0xff]   ;;  %v3710_v25 = vld [vmem:[%s4613_s2 + $0x20] ss:$12 sps:$4 sm:$0xff]  }
  0x17   :  { %627 = vmatprep.subr.bf16.mxu1 %v3599_v6  ;;  %s2509_s28 = smul.u32 24, %s36_s26  ;;  %v3720_v26 = vld [vmem:[%s4613_s2 + $0x38] ss:$12 sps:$4 sm:$0xff]   ;;  %v3727_v27 = vld [vmem:[%s4613_s2 + $0x50] ss:$12 sps:$4 sm:$0xff]   ;;  %v3325_v37 = vld [vmem:[%s4614_s3 + $0x28] sm:$0xff]  }
  0x18   :  { %s52_s29 = sshra.s32 %s2510_s14, 3  ;;  %s55_s30 = sand.u32 7, %s2510_s14  ;;  %v3734_v28 = vld [vmem:[%s4613_s2 + $0x68] ss:$12 sps:$4 sm:$0xff]   ;;  %v3741_v29 = vld [vmem:[%s4613_s2 + $0x80] ss:$12 sps:$4 sm:$0xff]  }
  0x19   :  { %s2511_s6 = smul.u32 24, %s52_s29  ;;  %s42_s9 = sadd.s32 %s2509_s28, %s39_s27  ;;  %v3748_v30 = vld [vmem:[%s4613_s2 + $0x98] ss:$12 sps:$4 sm:$0xff]   ;;  %v3755_v31 = vld [vmem:[%s4613_s2 + $0xb0] ss:$12 sps:$4 sm:$0xff]   ;;  %vm2396_vm2 = vcmask 60416  }
  0x1a   :  { %628 = vmatpush1.bf16.msra.mxu1 %v3605_v7  ;;  %s65_s10 = sshra.s32 %s3625_s17, 3  ;;  %s43_s15 = scalar_lea.vmem %s4612_s1, %s42_s9  ;;  %v3320_v32 = vld [vmem:[%s4614_s3] sm:$0xff]   ;;  %v3323_v35 = vld [vmem:[%s4614_s3 + $0x18] sm:$0xff]   ;;  %v3326_v38 = vld [vmem:[%s4614_s3 + $0x30] sm:$0xff]  }
  0x1b   :  { %629 = vmatprep.subr.bf16.mxu1 %v3611_v8  ;;  %s58_s16 = sadd.s32 %s2511_s6, %s55_s30  ;;  %v44_v19 = vld [vmem:[%s43_s15] ss:$8 sm:$0x7]  ;;  %s68_s21 = sand.u32 7, %s3625_s17  ;;  %2955 = vmatpush3.bf16.msra.mxu0 %v3320_v32  ;;  %v3327_v39 = vld [vmem:[%s4614_s3 + $0x38] sm:$0xff]  }
  0x1c   :  { %s59_s20 = scalar_lea.vmem %s4612_s1, %s58_s16  ;;  %49 = vst.msk [vmem:[#allocation2] ss:$8 sm:$0x7] %vm3658_vm1, %v44_v19  ;;  %s2513_s23 = smul.u32 24, %s65_s10  ;;  %2956 = vmatprep.subr.bf16.mxu0 %v3533_v3  ;;  %v3324_v36 = vld [vmem:[%s4614_s3 + $0x20] sm:$0xff]  }
  0x1d   :  { %v60_v20 = vld [vmem:[%s59_s20] ss:$8 sm:$0x7]  ;;  %s78_s24 = sshra.s32 %s3639_s22, 3  ;;  %s81_s26 = sand.u32 7, %s3639_s22 }
  0x1e   :  { %630 = vmatpush1.bf16.msra.mxu1 %v3616_v9  ;;  %62 = vst.msk [vmem:[#allocation2 + $0x1] ss:$8 sm:$0x7] %vm3658_vm1, %v60_v20  ;;  %s2515_s27 = smul.u32 24, %s78_s24  ;;  %s71_s28 = sadd.s32 %s2513_s23, %s68_s21  ;;  %v3834_v57 = vld [vmem:[%s4615_s4] ss:$0 sm:$0xff] }
  0x1f   :  { %631 = vmatprep.subr.bf16.mxu1 %v3623_v10  ;;  %s72_s30 = scalar_lea.vmem %s4612_s1, %s71_s28  ;;  %2957 = vmatpush3.bf16.msra.mxu0 %v3321_v33  ;;  %s2516_s15 = sld [smem:[#allocation3 + $0x1]] }
  0x20   :  { %s84_s6 = sadd.s32 %s2515_s27, %s81_s26  ;;  %v73_v22 = vld [vmem:[%s72_s30] ss:$8 sm:$0x7]  ;;  %2958 = vmatprep.subr.bf16.mxu0 %v3533_v3  ;;  %s2518_s16 = sld [smem:[#allocation3 + $0x9]] }
  0x21   :  { %s85_s9 = scalar_lea.vmem %s4612_s1, %s84_s6  ;;  %75 = vst.msk [vmem:[#allocation2 + $0x2] ss:$8 sm:$0x7] %vm3658_vm1, %v73_v22  ;;  %s2520_s18 = sld [smem:[#allocation3 + $0x11]] }
  0x22   :  { %632 = vmatpush1.bf16.msra.mxu1 %v3630_v11  ;;  %v86_v24 = vld [vmem:[%s85_s9] ss:$8 sm:$0x7]  ;;  %s2522_s19 = sld [smem:[#allocation3 + $0x19]]  ;;  %s2526_s14 = sld [smem:[#allocation3 + $0xa]] }
  0x23   :  { %633 = vmatprep.subr.bf16.mxu1 %v3636_v12  ;;  %88 = vst.msk [vmem:[#allocation2 + $0x3] ss:$8 sm:$0x7] %vm3658_vm1, %v86_v24  ;;  %2959 = vmatpush3.bf16.msra.mxu0 %v3322_v34 }
  0x24   :  { %2960 = vmatprep.subr.bf16.mxu0 %v3533_v3 }
  0x25   :  { %s91_s20 = sshra.s32 %s2516_s15, 3  ;;  %s94_s21 = sand.u32 7, %s2516_s15 }
  0x26   :  { %634 = vmatpush1.bf16.msra.mxu1 %v3644_v13  ;;  %s2517_s23 = smul.u32 24, %s91_s20  ;;  %s104_s24 = sshra.s32 %s2518_s16, 3 }
  0x27   :  { %635 = vmatprep.subr.bf16.mxu1 %v3649_v15  ;;  %2961 = vmatpush3.bf16.msra.mxu0 %v3323_v35  ;;  %s107_s25 = sand.u32 7, %s2518_s16  ;;  %s2519_s0 = smul.u32 24, %s104_s24 }
  0x28   :  { %2962 = vmatprep.subr.bf16.mxu0 %v3533_v3  ;;  %s97_s26 = sadd.s32 %s2517_s23, %s94_s21  ;;  %s117_s27 = sshra.s32 %s2520_s18, 3 }
  0x29   :  { %s98_s29 = scalar_lea.vmem %s4612_s1, %s97_s26  ;;  %s110_s30 = sadd.s32 %s2519_s0, %s107_s25 }
  0x2a   :  { %636 = vmatpush1.bf16.msra.mxu1 %v3656_v16  ;;  %v99_v40 = vld [vmem:[%s98_s29] ss:$8 sm:$0x7]  ;;  %s111_s8 = scalar_lea.vmem %s4612_s1, %s110_s30  ;;  %s120_s9 = sand.u32 7, %s2520_s18  ;;  %v494_v63 = vld [vmem:[#allocation2 + $0x10] sm:$0xf] }
  0x2b   :  { %637 = vmatprep.subr.bf16.mxu1 %v3666_v18  ;;  %2963 = vmatpush3.bf16.msra.mxu0 %v3324_v36  ;;  %101 = vst.msk [vmem:[#allocation2 + $0x4] ss:$8 sm:$0x7] %vm3658_vm1, %v99_v40  ;;  %v112_v41 = vld [vmem:[%s111_s8] ss:$8 sm:$0x7] }
  0x2c   :  { %2964 = vmatprep.subr.bf16.mxu0 %v3533_v3  ;;  %s2521_s10 = smul.u32 24, %s117_s27  ;;  %s130_s11 = sshra.s32 %s2522_s19, 3  ;;  %114 = vst.msk [vmem:[#allocation2 + $0x5] ss:$8 sm:$0x7] %vm3658_vm1, %v112_v41  ;;  %v3333_v40 = vld [vmem:[%s4614_s3 + $0x68] sm:$0xff]  }
  0x2d   :  { %s133_s22 = sand.u32 7, %s2522_s19  ;;  %s2523_s12 = smul.u32 24, %s130_s11  ;;  %v492_v44 = vld [vmem:[#allocation2] sm:$0xf]  ;;  %v493_v51 = vld [vmem:[#allocation2 + $0x8] sm:$0xf] }
  0x2e   :  { %638 = vmatpush1.bf16.msra.mxu1 %v3683_v21  ;;  %s123_s13 = sadd.s32 %s2521_s10, %s120_s9  ;;  %v3334_v41 = vld [vmem:[%s4614_s3 + $0x70] sm:$0xff]   ;;  %s2528_s15 = sld [smem:[#allocation3 + $0x12]] }
  0x2f   :  { %2934 = vmatprep.subr.bf16.mxu1 %v3533_v3  ;;  %2965 = vmatpush3.bf16.msra.mxu0 %v3325_v37  ;;  %s124_s16 = scalar_lea.vmem %s4612_s1, %s123_s13  ;;  %s136_s20 = sadd.s32 %s2523_s12, %s133_s22  ;;  %v3330_v37 = vld [vmem:[%s4614_s3 + $0x50] sm:$0xff]  }
  0x30   :  { %2966 = vmatprep.subr.bf16.mxu0 %v3533_v3  ;;  %v125_v42 = vld [vmem:[%s124_s16] ss:$8 sm:$0x7]  ;;  %s137_s23 = scalar_lea.vmem %s4612_s1, %s136_s20  ;;  %s2524_s13 = sld [smem:[#allocation3 + $0x2]] }
  0x31   :  { %656 = vmatmul.mubr.bf16.vlgmr.msra.gmra.mrb[0].mxu1 %v3532_v2  ;;  %127 = vst.msk [vmem:[#allocation2 + $0x6] ss:$8 sm:$0x7] %vm3658_vm1, %v125_v42  ;;  %v138_v43 = vld [vmem:[%s137_s23] ss:$8 sm:$0x7] }
  0x32   :  { %2935 = vmatpush3.bf16.msra.mxu1 %v3699_v23  ;;  %2950 = vmatprep.mubr.msk.bf16.mxu1 %vm3534_vm0, %v3533_v3  ;;  %140 = vst.msk [vmem:[#allocation2 + $0x7] ss:$8 sm:$0x7] %vm3658_vm1, %v138_v43  ;;  %v3335_v42 = vld [vmem:[%s4614_s3 + $0x78] sm:$0xff]   ;;  %s2530_s16 = sld [smem:[#allocation3 + $0x1a]]  ;;  %s156_s23 = sshra.s32 %s2526_s14, 3 }
  0x33   :  { %2936 = vmatprep.subr.bf16.mxu1 %v3533_v3  ;;  %2967 = vmatpush3.bf16.msra.mxu0 %v3326_v38  ;;  %v3331_v38 = vld [vmem:[%s4614_s3 + $0x58] sm:$0xff]   ;;  %s159_s19 = sand.u32 7, %s2526_s14  ;;  %s2527_s24 = smul.u32 24, %s156_s23 }
  0x34   :  { %2968 = vmatprep.subr.bf16.mxu0 %v3533_v3  ;;  %s169_s0 = sshra.s32 %s2528_s15, 3  ;;  %s172_s7 = sand.u32 7, %s2528_s15 }
  0x35   :  { %s162_s17 = sadd.s32 %s2527_s24, %s159_s19  ;;  %s2529_s8 = smul.u32 24, %s169_s0 }
  0x36   :  { %2937 = vmatpush3.bf16.msra.mxu1 %v3710_v25  ;;  %s143_s20 = sshra.s32 %s2524_s13, 3  ;;  %s146_s21 = sand.u32 7, %s2524_s13 }
  0x37   :  { %2938 = vmatprep.subr.bf16.mxu1 %v3533_v3  ;;  %2969 = vmatpush3.bf16.msra.mxu0 %v3327_v39  ;;  %v3332_v39 = vld [vmem:[%s4614_s3 + $0x60] sm:$0xff]   ;;  %s2525_s18 = smul.u32 24, %s143_s20  ;;  %s163_s6 = scalar_lea.vmem %s4612_s1, %s162_s17 }
  0x38   :  { %2974 = vmatprep.subr.bf16.mxu0 %v3533_v3  ;;  %s182_s9 = sshra.s32 %s2530_s16, 3  ;;  %s185_s10 = sand.u32 7, %s2530_s16 }
  0x39   :  { %s149_s25 = sadd.s32 %s2525_s18, %s146_s21  ;;  %s2531_s11 = smul.u32 24, %s182_s9 }
  0x3a   :  { %2939 = vmatpush3.bf16.msra.mxu1 %v3720_v26  ;;  %s150_s28 = scalar_lea.vmem %s4612_s1, %s149_s25  ;;  %s175_s22 = sadd.s32 %s2529_s8, %s172_s7 }
  0x3b   :  { %2940 = vmatprep.subr.bf16.mxu1 %v3533_v3  ;;  %v151_v43 = vld [vmem:[%s150_s28] ss:$8 sm:$0x7]  ;;  %s176_s14 = scalar_lea.vmem %s4612_s1, %s175_s22  ;;  %s188_s20 = sadd.s32 %s2531_s11, %s185_s10 }
  0x3c   :  { %153 = vst.msk [vmem:[#allocation2 + $0x18] ss:$8 sm:$0x7] %vm3658_vm1, %v151_v43  ;;  %s189_s18 = scalar_lea.vmem %s4612_s1, %s188_s20  ;;  %v3964_v43 = vld [vmem:[%s4613_s2] ss:$12 sps:$4 sm:$0xff]   ;;  %s2532_s20 = sld [smem:[#allocation3 + $0x3]] }
  0x3d   :  { %s2534_s21 = sld [smem:[#allocation3 + $0xb]] }
  0x3e   :  { %2941 = vmatpush3.bf16.msra.mxu1 %v3727_v27  ;;  %s2536_s15 = sld [smem:[#allocation3 + $0x13]] }
  0x3f   :  { %2942 = vmatprep.subr.bf16.mxu1 %v3533_v3 }
  0x42   :  { %2943 = vmatpush3.bf16.msra.mxu1 %v3734_v28  ;;  %s195_s16 = sshra.s32 %s2532_s20, 3  ;;  %s198_s23 = sand.u32 7, %s2532_s20 }
  0x43   :  { %2944 = vmatprep.subr.bf16.mxu1 %v3533_v3  ;;  %s2533_s19 = smul.u32 24, %s195_s16  ;;  %s208_s24 = sshra.s32 %s2534_s21, 3 }
  0x44   :  { %s211_s25 = sand.u32 7, %s2534_s21  ;;  %s2535_s0 = smul.u32 24, %s208_s24 }
  0x45   :  { %s201_s26 = sadd.s32 %s2533_s19, %s198_s23  ;;  %s221_s27 = sshra.s32 %s2536_s15, 3 }
  0x46   :  { %2945 = vmatpush3.bf16.msra.mxu1 %v3741_v29  ;;  %s202_s29 = scalar_lea.vmem %s4612_s1, %s201_s26  ;;  %s214_s30 = sadd.s32 %s2535_s0, %s211_s25 }
  0x47   :  { %2946 = vmatprep.subr.bf16.mxu1 %v3533_v3  ;;  %s215_s8 = scalar_lea.vmem %s4612_s1, %s214_s30  ;;  %s224_s9 = sand.u32 7, %s2536_s15 }
  0x48   :  { %s2537_s10 = smul.u32 24, %s221_s27  ;;  %s2544_s20 = sld [smem:[#allocation3 + $0x14]] }
  0x49   :  { %s2552_s26 = sld [smem:[#allocation3 + $0x15]] }
  0x4a   :  { %2947 = vmatpush3.bf16.msra.mxu1 %v3748_v30  ;;  %s227_s13 = sadd.s32 %s2537_s10, %s224_s9  ;;  %s2554_s27 = sld [smem:[#allocation3 + $0x1d]] }
  0x4b   :  { %2948 = vmatprep.subr.bf16.mxu1 %v3533_v3  ;;  %s228_s21 = scalar_lea.vmem %s4612_s1, %s227_s13  ;;  %s2540_s13 = sld [smem:[#allocation3 + $0x4]] }
  0x4e   :  { %2949 = vmatpush3.bf16.msra.mxu1 %v3755_v31  ;;  %s273_s0 = sshra.s32 %s2544_s20, 3  ;;  %s276_s7 = sand.u32 7, %s2544_s20 }
  0x4f   :  { %839 = vmatprep.subr.bf16.mxu1 %v3572_v0 }
  0x51   :  { %2951 = vmatmul.mubr.bf16.vlgmr.msra.gmra.mrb[4].mxu1 %v3532_v2  ;;  %s250_s23 = sand.u32 7, %s2540_s13 }
  0x52   :  { %840 = vmatpush1.bf16.msra.mxu1 %v3577_v1  ;;  %871 = vmatprep.mubr.bf16.mxu1 %v3532_v2 }
  0x53   :  { %841 = vmatprep.subr.bf16.mxu1 %v3585_v4 }
  0x56   :  { %842 = vmatpush1.bf16.msra.mxu1 %v3593_v5 }
  0x57   :  { %843 = vmatprep.subr.bf16.mxu1 %v3599_v6 }
  0x5a   :  { %844 = vmatpush1.bf16.msra.mxu1 %v3605_v7 }
  0x5b   :  { %845 = vmatprep.subr.bf16.mxu1 %v3611_v8 }
  0x5e   :  { %846 = vmatpush1.bf16.msra.mxu1 %v3616_v9 }
  0x5f   :  { %847 = vmatprep.subr.bf16.mxu1 %v3623_v10 }
  0x62   :  { %848 = vmatpush1.bf16.msra.mxu1 %v3630_v11 }
  0x63   :  { %849 = vmatprep.subr.bf16.mxu1 %v3636_v12 }
  0x66   :  { %850 = vmatpush1.bf16.msra.mxu1 %v3644_v13 }
  0x67   :  { %851 = vmatprep.subr.bf16.mxu1 %v3649_v15 }
  0x6a   :  { %852 = vmatpush1.bf16.msra.mxu1 %v3656_v16 }
  0x6b   :  { %853 = vmatprep.subr.bf16.mxu1 %v3666_v18 }
  0x6e   :  { %854 = vmatpush1.bf16.msra.mxu1 %v3683_v21 }
  0x6f   :  { %1067 = vmatprep.subr.bf16.mxu1 %v3572_v0 }
 0x104   :  { %v657_v45 = vpop.f32.mrb[0].mxu1 }
 0x105   :  { %v704_v46 = vadd.f32 %v657_v45, %v492_v44  ;;  %v659_v47 = vpop.f32.mrb[1].mxu1  ;;  %v164_v44 = vld [vmem:[%s163_s6] ss:$8 sm:$0x7] }
 0x106   :  { %v661_v48 = vpop.f32.mrb[2].mxu1  ;;  %v705_v52 = vadd.f32 %v659_v47, %v493_v51  ;;  %166 = vst.msk [vmem:[#allocation2 + $0x19] ss:$8 sm:$0x7] %vm3658_vm1, %v164_v44  ;;  %v836_v47 = vld [vmem:[#allocation2] sm:$0xf0] }
 0x107   :  { %v2597_v49 = vmul.f32 -1.442695, %v704_v46  ;;  %v662_v50 = vpop.f32.mrb[3].mxu1  ;;  %v177_v45 = vld [vmem:[%s176_s14] ss:$8 sm:$0x7] }
 0x108   :  { %v2598_v53 = vmul.f32 -1.442695, %v705_v52  ;;  %179 = vst.msk [vmem:[#allocation2 + $0x1a] ss:$8 sm:$0x7] %vm3658_vm1, %v177_v45  ;;  %s2542_s14 = sld [smem:[#allocation3 + $0xc]] }
 0x109   :  { %3384 = vpow2.f32 %v2597_v49  ;;  %v190_v46 = vld [vmem:[%s189_s18] ss:$8 sm:$0x7]  ;;  %v837_v50 = vld [vmem:[#allocation2 + $0x8] sm:$0xf0]  ;;  %s2538_s18 = sld [smem:[#allocation3 + $0x1b]] }
 0x10a   :  { %3386 = vpow2.f32 %v2598_v53  ;;  %192 = vst.msk [vmem:[#allocation2 + $0x1b] ss:$8 sm:$0x7] %vm3658_vm1, %v190_v46  ;;  %v3971_v44 = vld [vmem:[%s4613_s2 + $0x1c] ss:$12 sps:$4 sm:$0xff]  }
 0x10f   :  { %s234_s11 = sshra.s32 %s2538_s18, 3  ;;  %s237_s22 = sand.u32 7, %s2538_s18 }
 0x110   :  { %s2539_s12 = smul.u32 24, %s234_s11  ;;  %s263_s18 = sand.u32 7, %s2542_s14 }
 0x111   :  { %v1065_v45 = vld [vmem:[#allocation2 + $0x20] sm:$0xf] }
 0x112   :  { %s240_s16 = sadd.s32 %s2539_s12, %s237_s22 }
 0x113   :  { %v3385_v54 = vpop.eup %3384  ;;  %s241_s19 = scalar_lea.vmem %s4612_s1, %s240_s16  ;;  %s247_s16 = sshra.s32 %s2540_s13, 3 }
 0x114   :  { %v712_v55 = vadd.f32 1.0, %v3385_v54  ;;  %v3387_v56 = vpop.eup %3386  ;;  %s2541_s15 = smul.u32 24, %s247_s16 }
 0x115   :  { %v713_v58 = vadd.f32 1.0, %v3387_v56 }
 0x116   :  { %3388 = vrcp.f32 %v712_v55  ;;  %s253_s25 = sadd.s32 %s2541_s15, %s250_s23  ;;  %s328_s23 = sand.u32 7, %s2552_s26 }
 0x117   :  { %3390 = vrcp.f32 %v713_v58  ;;  %s254_s28 = scalar_lea.vmem %s4612_s1, %s253_s25  ;;  %s2548_s25 = sld [smem:[#allocation3 + $0x5]] }
 0x120   :  { %v3389_v62 = vpop.eup %3388 }
 0x121   :  { %v3391_v22 = vpop.eup %3390 }
 0x122   :  { %v726_v24 = vsub.f32 1.0, %v3391_v22  ;;  %v728_v34 = vmul.f32 0.0, %v3391_v22 }
 0x124   :  { %v698_v59 = vpop.f32.mrb[4].mxu1 }
 0x125   :  { %v722_v60 = vadd.f32 %v3834_v57, %v698_v59  ;;  %v2952_v61 = vpop.f32.mrb[5].mxu1 }
 0x126   :  { %v701_v0 = vpop.f32.mrb[6].mxu1 }
 0x127   :  { %v723_v14 = vmul.f32 %v3389_v62, %v722_v60  ;;  %v2953_v19 = vpop.f32.mrb[7].mxu1 }
 0x129   :  { %v724_v20 = vadd.f32 %v723_v14, %v494_v63 }
 0x12b   :  { %3392 = vtanh.f32 %v724_v20 }
 0x135   :  { %v3393_v32 = vpop.eup %3392 }
 0x136   :  { %v727_v33 = vmul.f32 %v3393_v32, %v726_v24 }
 0x138   :  { %v3837_v35 = vadd.f32 %v728_v34, %v727_v33 }
 0x13a   :  { %v730_v36 = vpack.c.bf16 %v3837_v35, %v3837_v35  ;;  %v950_v0 = vrot.slane %v3837_v35, 4 }
 0x13c   :  { %2971 = vmatmul.mubr.bf16.vlgmr.msra.gmra.mrb[0].mxu0 %v730_v36  ;;  %872 = vmatmul.mubr.bf16.vlgmr.msra.gmra.mrb[8].mxu1 %v730_v36 }
 0x13d   :  { %2975 = vmatpush3.bf16.msra.mxu0 %v3699_v23  ;;  %2990 = vmatprep.mubr.msk.bf16.mxu0 %vm3534_vm0, %v3533_v3 }
 0x13e   :  { %2976 = vmatprep.subr.bf16.mxu0 %v3533_v3  ;;  %1068 = vmatpush1.bf16.msra.mxu1 %v3577_v1  ;;  %v3328_v1 = vld [vmem:[%s4614_s3 + $0x40] sm:$0xff]  }
 0x13f   :  { %1069 = vmatprep.subr.bf16.mxu1 %v3585_v4  ;;  %1099 = vmatprep.mubr.bf16.mxu1 %v3532_v2  ;;  %v3329_v4 = vld [vmem:[%s4614_s3 + $0x48] sm:$0xff]  }
 0x141   :  { %2977 = vmatpush3.bf16.msra.mxu0 %v3710_v25 }
 0x142   :  { %2978 = vmatprep.subr.bf16.mxu0 %v3533_v3  ;;  %1070 = vmatpush1.bf16.msra.mxu1 %v3593_v5 }
 0x143   :  { %1071 = vmatprep.subr.bf16.mxu1 %v3599_v6 }
 0x145   :  { %2979 = vmatpush3.bf16.msra.mxu0 %v3720_v26 }
 0x146   :  { %2980 = vmatprep.subr.bf16.mxu0 %v3533_v3  ;;  %1072 = vmatpush1.bf16.msra.mxu1 %v3605_v7 }
 0x147   :  { %1073 = vmatprep.subr.bf16.mxu1 %v3611_v8 }
 0x149   :  { %2981 = vmatpush3.bf16.msra.mxu0 %v3727_v27 }
 0x14a   :  { %2982 = vmatprep.subr.bf16.mxu0 %v3533_v3  ;;  %1074 = vmatpush1.bf16.msra.mxu1 %v3616_v9 }
 0x14b   :  { %1075 = vmatprep.subr.bf16.mxu1 %v3623_v10 }
 0x14d   :  { %2983 = vmatpush3.bf16.msra.mxu0 %v3734_v28 }
 0x14e   :  { %2984 = vmatprep.subr.bf16.mxu0 %v3533_v3  ;;  %1076 = vmatpush1.bf16.msra.mxu1 %v3630_v11 }
 0x14f   :  { %1077 = vmatprep.subr.bf16.mxu1 %v3636_v12 }
 0x151   :  { %2985 = vmatpush3.bf16.msra.mxu0 %v3741_v29 }
 0x152   :  { %2986 = vmatprep.subr.bf16.mxu0 %v3533_v3  ;;  %1078 = vmatpush1.bf16.msra.mxu1 %v3644_v13 }
 0x153   :  { %1079 = vmatprep.subr.bf16.mxu1 %v3649_v15 }
 0x155   :  { %2987 = vmatpush3.bf16.msra.mxu0 %v3748_v30 }
 0x156   :  { %2988 = vmatprep.subr.bf16.mxu0 %v3533_v3  ;;  %1080 = vmatpush1.bf16.msra.mxu1 %v3656_v16 }
 0x157   :  { %1081 = vmatprep.subr.bf16.mxu1 %v3666_v18 }
 0x159   :  { %2989 = vmatpush3.bf16.msra.mxu0 %v3755_v31 }
 0x15a   :  { %2994 = vmatprep.subr.bf16.mxu0 %v3533_v3  ;;  %1082 = vmatpush1.bf16.msra.mxu1 %v3683_v21 }
 0x15b   :  { %3014 = vmatprep.subr.bf16.mxu1 %v3533_v3 }
 0x15c   :  { %2991 = vmatmul.mubr.bf16.vlgmr.msra.gmra.mrb[4].mxu0 %v730_v36 }
 0x15d   :  { %3010 = vmatprep.mubr.msk.bf16.mxu0 %vm3534_vm0, %v3533_v3  ;;  %2995 = vmatpush3.bf16.msra.mxu0 %v3328_v1  ;;  %v838_v1 = vld [vmem:[#allocation2 + $0x10] sm:$0xf0] }
 0x15e   :  { %2996 = vmatprep.subr.bf16.mxu0 %v3533_v3 }
 0x161   :  { %2997 = vmatpush3.bf16.msra.mxu0 %v3329_v4 }
 0x162   :  { %2998 = vmatprep.subr.bf16.mxu0 %v3533_v3 }
 0x165   :  { %2999 = vmatpush3.bf16.msra.mxu0 %v3330_v37 }
 0x166   :  { %3000 = vmatprep.subr.bf16.mxu0 %v3533_v3 }
 0x169   :  { %3001 = vmatpush3.bf16.msra.mxu0 %v3331_v38 }
 0x16a   :  { %3002 = vmatprep.subr.bf16.mxu0 %v3533_v3 }
 0x16d   :  { %3003 = vmatpush3.bf16.msra.mxu0 %v3332_v39 }
 0x16e   :  { %3004 = vmatprep.subr.bf16.mxu0 %v3533_v3 }
 0x171   :  { %3005 = vmatpush3.bf16.msra.mxu0 %v3333_v40 }
 0x172   :  { %3006 = vmatprep.subr.bf16.mxu0 %v3533_v3 }
 0x175   :  { %3007 = vmatpush3.bf16.msra.mxu0 %v3334_v41 }
 0x176   :  { %3008 = vmatprep.subr.bf16.mxu0 %v3533_v3 }
 0x179   :  { %3009 = vmatpush3.bf16.msra.mxu0 %v3335_v42 }
 0x17a   :  { %3034 = vmatprep.subr.bf16.mxu0 %v3533_v3 }
 0x20f   :  { %v873_v48 = vpop.f32.mrb[8].mxu1 }
 0x210   :  { %v922_v49 = vrot.slane %v873_v48, 4  ;;  %v875_v51 = vpop.f32.mrb[9].mxu1 }
 0x211   :  { %v923_v52 = vrot.slane %v875_v51, 4  ;;  %v877_v53 = vpop.f32.mrb[10].mxu1 }
 0x212   :  { %v926_v54 = vadd.f32 %v922_v49, %v836_v47  ;;  %v878_v55 = vpop.f32.mrb[11].mxu1 }
 0x213   :  { %v927_v56 = vadd.f32 %v923_v52, %v837_v50 }
 0x214   :  { %v2608_v58 = vmul.f32 -1.442695, %v926_v54 }
 0x215   :  { %v2609_v59 = vmul.f32 -1.442695, %v927_v56 }
 0x217   :  { %3394 = vpow2.f32 %v2609_v59 }
 0x218   :  { %3396 = vpow2.f32 %v2608_v58 }
 0x221   :  { %v3395_v60 = vpop.eup %3394 }
 0x222   :  { %v3397_v61 = vpop.eup %3396  ;;  %v935_v62 = vadd.f32 1.0, %v3395_v60 }
 0x223   :  { %v934_v63 = vadd.f32 1.0, %v3397_v61 }
 0x224   :  { %3398 = vrcp.f32 %v935_v62 }
 0x225   :  { %3400 = vrcp.f32 %v934_v63 }
 0x22e   :  { %v3399_v14 = vpop.eup %3398 }
 0x22f   :  { %v914_v19 = vpop.f32.mrb[4].mxu0  ;;  %v952_v20 = vmul.f32 %v3399_v14, %v950_v0  ;;  %v3401_v36 = vpop.eup %3400  ;;  %v947_v38 = vsub.f32 1.0, %v3399_v14 }
 0x230   :  { %v940_v22 = vadd.f32 %v3834_v57, %v914_v19  ;;  %v2992_v24 = vpop.f32.mrb[5].mxu0  ;;  %v1066_v19 = vld [vmem:[#allocation2 + $0x28] sm:$0xf] }
 0x231   :  { %v917_v32 = vpop.f32.mrb[6].mxu0 }
 0x232   :  { %v942_v33 = vrot.slane %v940_v22, 4  ;;  %v2993_v34 = vpop.f32.mrb[7].mxu0 }
 0x234   :  { %v944_v4 = vmul.f32 %v3401_v36, %v942_v33 }
 0x236   :  { %v945_v37 = vadd.f32 %v944_v4, %v838_v1 }
 0x238   :  { %3402 = vtanh.f32 %v945_v37  ;;  %v4049_v37 = vld [vmem:[%s4613_s2 + $0x8] ss:$12 sps:$4 sm:$0xff]  }
 0x242   :  { %v3403_v39 = vpop.eup %3402 }
 0x243   :  { %v948_v40 = vmul.f32 %v3403_v39, %v947_v38  ;;  %v4063_v38 = vld [vmem:[%s4613_s2 + $0x18] ss:$12 sps:$4 sm:$0xff]   ;;  %v4069_v39 = vld [vmem:[%s4613_s2 + $0x34] ss:$12 sps:$4 sm:$0xff]  }
 0x245   :  { %v3932_v41 = vadd.f32 %v952_v20, %v948_v40  ;;  %v4083_v40 = vld [vmem:[%s4613_s2 + $0x4c] ss:$12 sps:$4 sm:$0xff]  }
 0x247   :  { %v954_v35 = vpack.c.bf16 %v3932_v41, %v3932_v41  ;;  %v1169_v59 = vrot.slane %v3932_v41, 4  ;;  %v4097_v41 = vld [vmem:[%s4613_s2 + $0x64] ss:$12 sps:$4 sm:$0xff]  }
 0x249   :  { %v973_v42 = vrot.slane %v954_v35, 2  ;;  %v4111_v35 = vld [vmem:[%s4613_s2 + $0x7c] ss:$12 sps:$4 sm:$0xff]  }
 0x24b   :  { %3011 = vmatmul.mubr.bf16.vlgmr.msra.gmra.mrb[0].mxu0 %v973_v42  ;;  %1100 = vmatmul.mubr.bf16.vlgmr.msra.gmra.mrb[12].mxu1 %v973_v42 }
 0x24c   :  { %3015 = vmatpush3.bf16.msra.mxu1 %v3699_v23  ;;  %3030 = vmatprep.mubr.msk.bf16.mxu1 %vm3534_vm0, %v3533_v3  ;;  %v3958_v23 = vld [vmem:[%s4613_s2 + $0x4] ss:$12 sps:$4 sm:$0xff]  }
 0x24d   :  { %3016 = vmatprep.subr.bf16.mxu1 %v3533_v3  ;;  %3050 = vmatprep.mubr.msk.bf16.mxu0 %vm3534_vm0, %v3533_v3 }
 0x250   :  { %3017 = vmatpush3.bf16.msra.mxu1 %v3710_v25 }
 0x251   :  { %3018 = vmatprep.subr.bf16.mxu1 %v3533_v3 }
 0x254   :  { %3019 = vmatpush3.bf16.msra.mxu1 %v3720_v26 }
 0x255   :  { %3020 = vmatprep.subr.bf16.mxu1 %v3533_v3 }
 0x258   :  { %3021 = vmatpush3.bf16.msra.mxu1 %v3727_v27 }
 0x259   :  { %3022 = vmatprep.subr.bf16.mxu1 %v3533_v3 }
 0x25c   :  { %3023 = vmatpush3.bf16.msra.mxu1 %v3734_v28 }
 0x25d   :  { %3024 = vmatprep.subr.bf16.mxu1 %v3533_v3 }
 0x260   :  { %3025 = vmatpush3.bf16.msra.mxu1 %v3741_v29 }
 0x261   :  { %3026 = vmatprep.subr.bf16.mxu1 %v3533_v3 }
 0x264   :  { %3027 = vmatpush3.bf16.msra.mxu1 %v3748_v30 }
 0x265   :  { %3028 = vmatprep.subr.bf16.mxu1 %v3533_v3 }
 0x268   :  { %3029 = vmatpush3.bf16.msra.mxu1 %v3755_v31 }
 0x269   :  { %1283 = vmatprep.subr.bf16.mxu1 %v3958_v23 }
 0x26b   :  { %3031 = vmatmul.mubr.bf16.vlgmr.msra.gmra.mrb[16].mxu1 %v973_v42  ;;  %v4125_v42 = vld [vmem:[%s4613_s2 + $0x94] ss:$12 sps:$4 sm:$0xff]  }
 0x26c   :  { %1284 = vmatpush1.bf16.msra.mxu1 %v3964_v43  ;;  %1315 = vmatprep.mubr.bf16.mxu1 %v3532_v2 }
 0x26d   :  { %1285 = vmatprep.subr.bf16.mxu1 %v3971_v44 }
 0x270   :  { %1286 = vmatpush1.bf16.msra.mxu1 %v3593_v5  ;;  %v3336_v5 = vld [vmem:[%s4614_s3 + $0x80] sm:$0xff]  }
 0x271   :  { %1287 = vmatprep.subr.bf16.mxu1 %v3599_v6  ;;  %3035 = vmatpush3.bf16.msra.mxu0 %v3336_v5  ;;  %v3337_v6 = vld [vmem:[%s4614_s3 + $0x88] sm:$0xff]  }
 0x272   :  { %3036 = vmatprep.subr.bf16.mxu0 %v3533_v3  ;;  %v4139_v5 = vld [vmem:[%s4613_s2 + $0xac] ss:$12 sps:$4 sm:$0xff]  }
 0x274   :  { %1288 = vmatpush1.bf16.msra.mxu1 %v3605_v7  ;;  %v3338_v7 = vld [vmem:[%s4614_s3 + $0x90] sm:$0xff]  }
 0x275   :  { %1289 = vmatprep.subr.bf16.mxu1 %v3611_v8  ;;  %3037 = vmatpush3.bf16.msra.mxu0 %v3337_v6  ;;  %v3339_v8 = vld [vmem:[%s4614_s3 + $0x98] sm:$0xff]   ;;  %v3344_v6 = vld [vmem:[%s4614_s3 + $0xc0] sm:$0xff]  }
 0x276   :  { %3038 = vmatprep.subr.bf16.mxu0 %v3533_v3 }
 0x278   :  { %1290 = vmatpush1.bf16.msra.mxu1 %v3616_v9  ;;  %v3340_v9 = vld [vmem:[%s4614_s3 + $0xa0] sm:$0xff]  }
 0x279   :  { %1291 = vmatprep.subr.bf16.mxu1 %v3623_v10  ;;  %3039 = vmatpush3.bf16.msra.mxu0 %v3338_v7  ;;  %v3341_v10 = vld [vmem:[%s4614_s3 + $0xa8] sm:$0xff]   ;;  %v3346_v7 = vld [vmem:[%s4614_s3 + $0xd0] sm:$0xff]  }
 0x27a   :  { %3040 = vmatprep.subr.bf16.mxu0 %v3533_v3 }
 0x27c   :  { %1292 = vmatpush1.bf16.msra.mxu1 %v3630_v11  ;;  %v3342_v11 = vld [vmem:[%s4614_s3 + $0xb0] sm:$0xff]  }
 0x27d   :  { %1293 = vmatprep.subr.bf16.mxu1 %v3636_v12  ;;  %3041 = vmatpush3.bf16.msra.mxu0 %v3339_v8  ;;  %v3343_v12 = vld [vmem:[%s4614_s3 + $0xb8] sm:$0xff]  }
 0x27e   :  { %3042 = vmatprep.subr.bf16.mxu0 %v3533_v3  ;;  %v3347_v8 = vld [vmem:[%s4614_s3 + $0xd8] sm:$0xff]  }
 0x280   :  { %1294 = vmatpush1.bf16.msra.mxu1 %v3644_v13  ;;  %v203_v13 = vld [vmem:[%s202_s29] ss:$8 sm:$0x7] }
 0x281   :  { %1295 = vmatprep.subr.bf16.mxu1 %v3649_v15  ;;  %3043 = vmatpush3.bf16.msra.mxu0 %v3340_v9  ;;  %205 = vst.msk [vmem:[#allocation2 + $0x1c] ss:$8 sm:$0x7] %vm3658_vm1, %v203_v13  ;;  %v216_v15 = vld [vmem:[%s215_s8] ss:$8 sm:$0x7] }
 0x282   :  { %3044 = vmatprep.subr.bf16.mxu0 %v3533_v3  ;;  %218 = vst.msk [vmem:[#allocation2 + $0x1d] ss:$8 sm:$0x7] %vm3658_vm1, %v216_v15  ;;  %v3348_v9 = vld [vmem:[%s4614_s3 + $0xe0] sm:$0xff]   ;;  %s2545_s8 = smul.u32 24, %s273_s0  ;;  %s2550_s0 = sld [smem:[#allocation3 + $0xd]] }
 0x283   :  { %v255_v13 = vld [vmem:[%s254_s28] ss:$8 sm:$0x7]  ;;  %s299_s28 = sshra.s32 %s2548_s25, 3 }
 0x284   :  { %1296 = vmatpush1.bf16.msra.mxu1 %v3656_v16  ;;  %v229_v16 = vld [vmem:[%s228_s21] ss:$8 sm:$0x7]  ;;  %s2546_s21 = sld [smem:[#allocation3 + $0x1c]]  ;;  %s279_s22 = sadd.s32 %s2545_s8, %s276_s7 }
 0x285   :  { %1297 = vmatprep.subr.bf16.mxu1 %v3666_v18  ;;  %3045 = vmatpush3.bf16.msra.mxu0 %v3341_v10  ;;  %231 = vst.msk [vmem:[#allocation2 + $0x1e] ss:$8 sm:$0x7] %vm3658_vm1, %v229_v16  ;;  %v242_v18 = vld [vmem:[%s241_s19] ss:$8 sm:$0x7] }
 0x286   :  { %3046 = vmatprep.subr.bf16.mxu0 %v3533_v3  ;;  %244 = vst.msk [vmem:[#allocation2 + $0x1f] ss:$8 sm:$0x7] %vm3658_vm1, %v242_v18  ;;  %v3349_v10 = vld [vmem:[%s4614_s3 + $0xe8] sm:$0xff]   ;;  %s260_s19 = sshra.s32 %s2542_s14, 3  ;;  %s280_s14 = scalar_lea.vmem %s4612_s1, %s279_s22 }
 0x287   :  { %s2543_s24 = smul.u32 24, %s260_s19  ;;  %257 = vst.msk [vmem:[#allocation2 + $0x30] ss:$8 sm:$0x7] %vm3658_vm1, %v255_v13  ;;  %v4255_v13 = vld [vmem:[%s4613_s2 + $0x98] ss:$12 sps:$4 sm:$0xff]  }
 0x288   :  { %1298 = vmatpush1.bf16.msra.mxu1 %v3683_v21  ;;  %v1064_v21 = vld [vmem:[#allocation2 + $0x18] sm:$0xf]  ;;  %s2549_s29 = smul.u32 24, %s299_s28  ;;  %s312_s30 = sshra.s32 %s2550_s0, 3 }
 0x289   :  { %1511 = vmatprep.subr.bf16.mxu1 %v3958_v23  ;;  %3047 = vmatpush3.bf16.msra.mxu0 %v3342_v11  ;;  %v3350_v11 = vld [vmem:[%s4614_s3 + $0xf0] sm:$0xff]   ;;  %s266_s17 = sadd.s32 %s2543_s24, %s263_s18  ;;  %s2551_s7 = smul.u32 24, %s312_s30 }
 0x28a   :  { %3048 = vmatprep.subr.bf16.mxu0 %v3533_v3  ;;  %s267_s6 = scalar_lea.vmem %s4612_s1, %s266_s17  ;;  %s286_s9 = sshra.s32 %s2546_s21, 3  ;;  %v281_v16 = vld [vmem:[%s280_s14] ss:$8 sm:$0x7] }
 0x28b   :  { %v268_v15 = vld [vmem:[%s267_s6] ss:$8 sm:$0x7]  ;;  %s289_s10 = sand.u32 7, %s2546_s21  ;;  %s2547_s11 = smul.u32 24, %s286_s9 }
 0x28c   :  { %270 = vst.msk [vmem:[#allocation2 + $0x31] ss:$8 sm:$0x7] %vm3658_vm1, %v268_v15  ;;  %283 = vst.msk [vmem:[#allocation2 + $0x32] ss:$8 sm:$0x7] %vm3658_vm1, %v281_v16 }
 0x28d   :  { %3049 = vmatpush3.bf16.msra.mxu0 %v3343_v12  ;;  %v3351_v12 = vld [vmem:[%s4614_s3 + $0xf8] sm:$0xff]   ;;  %s292_s16 = sadd.s32 %s2547_s11, %s289_s10  ;;  %v3352_v16 = vld [vmem:[%s4614_s3 + $0x100] sm:$0xff]   ;;  %s302_s17 = sand.u32 7, %s2548_s25 }
 0x28e   :  { %3054 = vmatprep.subr.bf16.mxu0 %v3533_v3  ;;  %s293_s15 = scalar_lea.vmem %s4612_s1, %s292_s16  ;;  %v4262_v15 = vld [vmem:[%s4613_s2 + $0xb0] ss:$12 sps:$4 sm:$0xff]   ;;  %s315_s6 = sand.u32 7, %s2550_s0 }
 0x28f   :  { %v294_v18 = vld [vmem:[%s293_s15] ss:$8 sm:$0x7]  ;;  %s305_s8 = sadd.s32 %s2549_s29, %s302_s17  ;;  %s325_s9 = sshra.s32 %s2552_s26, 3 }
 0x290   :  { %296 = vst.msk [vmem:[#allocation2 + $0x33] ss:$8 sm:$0x7] %vm3658_vm1, %v294_v18  ;;  %v3353_v18 = vld [vmem:[%s4614_s3 + $0x108] sm:$0xff]   ;;  %s306_s22 = scalar_lea.vmem %s4612_s1, %s305_s8  ;;  %s318_s12 = sadd.s32 %s2551_s7, %s315_s6 }
 0x291   :  { %s319_s16 = scalar_lea.vmem %s4612_s1, %s318_s12  ;;  %s2553_s20 = smul.u32 24, %s325_s9 }
 0x292   :  { %s338_s15 = sshra.s32 %s2554_s27, 3  ;;  %s341_s21 = sand.u32 7, %s2554_s27 }
 0x293   :  { %s2555_s19 = smul.u32 24, %s338_s15  ;;  %s331_s18 = sadd.s32 %s2553_s20, %s328_s23 }
 0x294   :  { %s332_s0 = scalar_lea.vmem %s4612_s1, %s331_s18  ;;  %s2556_s18 = sld [smem:[#allocation3 + $0x6]] }
 0x295   :  { %s344_s28 = sadd.s32 %s2555_s19, %s341_s21  ;;  %s2558_s24 = sld [smem:[#allocation3 + $0xe]] }
 0x296   :  { %s345_s29 = scalar_lea.vmem %s4612_s1, %s344_s28  ;;  %s2560_s25 = sld [smem:[#allocation3 + $0x16]] }
 0x29a   :  { %s351_s28 = sshra.s32 %s2556_s18, 3  ;;  %s354_s17 = sand.u32 7, %s2556_s18 }
 0x29b   :  { %s2557_s26 = smul.u32 24, %s351_s28  ;;  %s367_s27 = sand.u32 7, %s2558_s24 }
 0x29c   :  { %s377_s7 = sshra.s32 %s2560_s25, 3  ;;  %s380_s14 = sand.u32 7, %s2560_s25 }
 0x29d   :  { %s357_s6 = sadd.s32 %s2557_s26, %s354_s17  ;;  %s2566_s17 = sld [smem:[#allocation3 + $0xf]] }
 0x29e   :  { %s358_s10 = scalar_lea.vmem %s4612_s1, %s357_s6  ;;  %s2568_s25 = sld [smem:[#allocation3 + $0x17]] }
 0x2a3   :  { %s419_s6 = sand.u32 7, %s2566_s17 }
 0x2a4   :  { %s429_s9 = sshra.s32 %s2568_s25, 3 }
 0x31e   :  { %v1101_v46 = vpop.f32.mrb[12].mxu1 }
 0x31f   :  { %v1148_v47 = vadd.f32 %v1101_v46, %v1064_v21  ;;  %v1103_v48 = vpop.f32.mrb[13].mxu1  ;;  %v1280_v21 = vld [vmem:[#allocation2 + $0x18] sm:$0xf0] }
 0x320   :  { %v1149_v49 = vadd.f32 %v1103_v48, %v1065_v45  ;;  %v1105_v50 = vpop.f32.mrb[14].mxu1 }
 0x321   :  { %v2634_v51 = vmul.f32 -1.442695, %v1148_v47  ;;  %v1106_v52 = vpop.f32.mrb[15].mxu1  ;;  %v1281_v47 = vld [vmem:[#allocation2 + $0x20] sm:$0xf0] }
 0x322   :  { %v2635_v53 = vmul.f32 -1.442695, %v1149_v49 }
 0x324   :  { %3404 = vpow2.f32 %v2635_v53 }
 0x325   :  { %3406 = vpow2.f32 %v2634_v51 }
 0x32e   :  { %v3405_v54 = vpop.eup %3404 }
 0x32f   :  { %v3407_v55 = vpop.eup %3406  ;;  %v1157_v56 = vadd.f32 1.0, %v3405_v54 }
 0x330   :  { %v1156_v58 = vadd.f32 1.0, %v3407_v55 }
 0x331   :  { %3408 = vrcp.f32 %v1157_v56 }
 0x332   :  { %3410 = vrcp.f32 %v1156_v58 }
 0x33b   :  { %v3409_v60 = vpop.eup %3408 }
 0x33c   :  { %v1171_v61 = vmul.f32 %v3409_v60, %v1169_v59  ;;  %v3411_v14 = vpop.eup %3410  ;;  %v1166_v33 = vsub.f32 1.0, %v3409_v60 }
 0x33e   :  { %v1142_v62 = vpop.f32.mrb[16].mxu1 }
 0x33f   :  { %v1162_v63 = vadd.f32 %v3834_v57, %v1142_v62  ;;  %v3032_v0 = vpop.f32.mrb[17].mxu1 }
 0x340   :  { %v1145_v20 = vpop.f32.mrb[18].mxu1 }
 0x341   :  { %v1163_v22 = vmul.f32 %v3411_v14, %v1162_v63  ;;  %v3033_v24 = vpop.f32.mrb[19].mxu1 }
 0x343   :  { %v1164_v32 = vadd.f32 %v1163_v22, %v1066_v19 }
 0x345   :  { %3412 = vtanh.f32 %v1164_v32 }
 0x34f   :  { %v3413_v34 = vpop.eup %3412 }
 0x350   :  { %v1167_v36 = vmul.f32 %v3413_v34, %v1166_v33  ;;  %v1282_v33 = vld [vmem:[#allocation2 + $0x28] sm:$0xf0] }
 0x352   :  { %v4042_v1 = vadd.f32 %v1171_v61, %v1167_v36 }
 0x354   :  { %v1173_v4 = vpack.c.bf16 %v4042_v1, %v4042_v1  ;;  %v1394_v61 = vrot.slane %v4042_v1, 4 }
 0x356   :  { %3051 = vmatmul.mubr.bf16.vlgmr.msra.gmra.mrb[0].mxu0 %v1173_v4  ;;  %1316 = vmatmul.mubr.bf16.vlgmr.msra.gmra.mrb[20].mxu1 %v1173_v4 }
 0x357   :  { %3055 = vmatpush3.bf16.msra.mxu0 %v4049_v37  ;;  %3070 = vmatprep.mubr.msk.bf16.mxu0 %vm3534_vm0, %v3533_v3 }
 0x358   :  { %3056 = vmatprep.subr.bf16.mxu0 %v3533_v3  ;;  %1512 = vmatpush1.bf16.msra.mxu1 %v3964_v43 }
 0x359   :  { %1513 = vmatprep.subr.bf16.mxu1 %v3971_v44  ;;  %1543 = vmatprep.mubr.bf16.mxu1 %v3532_v2 }
 0x35b   :  { %3057 = vmatpush3.bf16.msra.mxu0 %v3710_v25  ;;  %v4077_v25 = vld [vmem:[%s4613_s2 + $0x30] ss:$12 sps:$4 sm:$0xff]  }
 0x35c   :  { %3058 = vmatprep.subr.bf16.mxu0 %v3533_v3  ;;  %1514 = vmatpush1.bf16.msra.mxu1 %v4063_v38 }
 0x35d   :  { %1515 = vmatprep.subr.bf16.mxu1 %v4069_v39 }
 0x35f   :  { %3059 = vmatpush3.bf16.msra.mxu0 %v3720_v26  ;;  %v4091_v26 = vld [vmem:[%s4613_s2 + $0x48] ss:$12 sps:$4 sm:$0xff]  }
 0x360   :  { %3060 = vmatprep.subr.bf16.mxu0 %v3533_v3  ;;  %1516 = vmatpush1.bf16.msra.mxu1 %v4077_v25 }
 0x361   :  { %1517 = vmatprep.subr.bf16.mxu1 %v4083_v40 }
 0x363   :  { %3061 = vmatpush3.bf16.msra.mxu0 %v3727_v27  ;;  %v4105_v27 = vld [vmem:[%s4613_s2 + $0x60] ss:$12 sps:$4 sm:$0xff]  }
 0x364   :  { %3062 = vmatprep.subr.bf16.mxu0 %v3533_v3  ;;  %1518 = vmatpush1.bf16.msra.mxu1 %v4091_v26 }
 0x365   :  { %1519 = vmatprep.subr.bf16.mxu1 %v4097_v41 }
 0x367   :  { %3063 = vmatpush3.bf16.msra.mxu0 %v3734_v28  ;;  %v4119_v28 = vld [vmem:[%s4613_s2 + $0x78] ss:$12 sps:$4 sm:$0xff]  }
 0x368   :  { %3064 = vmatprep.subr.bf16.mxu0 %v3533_v3  ;;  %1520 = vmatpush1.bf16.msra.mxu1 %v4105_v27 }
 0x369   :  { %1521 = vmatprep.subr.bf16.mxu1 %v4111_v35 }
 0x36b   :  { %3065 = vmatpush3.bf16.msra.mxu0 %v3741_v29  ;;  %v4133_v29 = vld [vmem:[%s4613_s2 + $0x90] ss:$12 sps:$4 sm:$0xff]  }
 0x36c   :  { %3066 = vmatprep.subr.bf16.mxu0 %v3533_v3  ;;  %1522 = vmatpush1.bf16.msra.mxu1 %v4119_v28 }
 0x36d   :  { %1523 = vmatprep.subr.bf16.mxu1 %v4125_v42 }
 0x36f   :  { %3067 = vmatpush3.bf16.msra.mxu0 %v3748_v30  ;;  %v4147_v30 = vld [vmem:[%s4613_s2 + $0xa8] ss:$12 sps:$4 sm:$0xff]  }
 0x370   :  { %3068 = vmatprep.subr.bf16.mxu0 %v3533_v3  ;;  %1524 = vmatpush1.bf16.msra.mxu1 %v4133_v29 }
 0x371   :  { %1525 = vmatprep.subr.bf16.mxu1 %v4139_v5 }
 0x373   :  { %3069 = vmatpush3.bf16.msra.mxu0 %v3755_v31  ;;  %v3345_v31 = vld [vmem:[%s4614_s3 + $0xc8] sm:$0xff]  }
 0x374   :  { %3074 = vmatprep.subr.bf16.mxu0 %v3533_v3  ;;  %1526 = vmatpush1.bf16.msra.mxu1 %v4147_v30 }
 0x375   :  { %3094 = vmatprep.subr.bf16.mxu1 %v3533_v3 }
 0x376   :  { %3071 = vmatmul.mubr.bf16.vlgmr.msra.gmra.mrb[8].mxu0 %v1173_v4 }
 0x377   :  { %3090 = vmatprep.mubr.msk.bf16.mxu0 %vm3534_vm0, %v3533_v3  ;;  %3075 = vmatpush3.bf16.msra.mxu0 %v3344_v6 }
 0x378   :  { %3076 = vmatprep.subr.bf16.mxu0 %v3533_v3 }
 0x37b   :  { %3077 = vmatpush3.bf16.msra.mxu0 %v3345_v31 }
 0x37c   :  { %3078 = vmatprep.subr.bf16.mxu0 %v3533_v3 }
 0x37f   :  { %3079 = vmatpush3.bf16.msra.mxu0 %v3346_v7 }
 0x380   :  { %3080 = vmatprep.subr.bf16.mxu0 %v3533_v3 }
 0x383   :  { %3081 = vmatpush3.bf16.msra.mxu0 %v3347_v8 }
 0x384   :  { %3082 = vmatprep.subr.bf16.mxu0 %v3533_v3 }
 0x387   :  { %3083 = vmatpush3.bf16.msra.mxu0 %v3348_v9  ;;  %v4227_v9 = vld [vmem:[%s4613_s2 + $0x38] ss:$12 sps:$4 sm:$0xff]  }
 0x388   :  { %3084 = vmatprep.subr.bf16.mxu0 %v3533_v3 }
 0x38b   :  { %3085 = vmatpush3.bf16.msra.mxu0 %v3349_v10  ;;  %v4234_v10 = vld [vmem:[%s4613_s2 + $0x50] ss:$12 sps:$4 sm:$0xff]  }
 0x38c   :  { %3086 = vmatprep.subr.bf16.mxu0 %v3533_v3 }
 0x38f   :  { %3087 = vmatpush3.bf16.msra.mxu0 %v3350_v11  ;;  %v4241_v11 = vld [vmem:[%s4613_s2 + $0x68] ss:$12 sps:$4 sm:$0xff]  }
 0x390   :  { %3088 = vmatprep.subr.bf16.mxu0 %v3533_v3 }
 0x393   :  { %3089 = vmatpush3.bf16.msra.mxu0 %v3351_v12  ;;  %v4248_v12 = vld [vmem:[%s4613_s2 + $0x80] ss:$12 sps:$4 sm:$0xff]  }
 0x394   :  { %3114 = vmatprep.subr.bf16.mxu0 %v3533_v3 }
 0x429   :  { %v1317_v45 = vpop.f32.mrb[20].mxu1 }
 0x42a   :  { %v1366_v46 = vrot.slane %v1317_v45, 4  ;;  %v1319_v48 = vpop.f32.mrb[21].mxu1  ;;  %v3356_v45 = vld [vmem:[%s4614_s3 + $0x120] sm:$0xff]  }
 0x42b   :  { %v1367_v49 = vrot.slane %v1319_v48, 4  ;;  %v1321_v50 = vpop.f32.mrb[22].mxu1  ;;  %v3359_v48 = vld [vmem:[%s4614_s3 + $0x138] sm:$0xff]  }
 0x42c   :  { %v1370_v51 = vadd.f32 %v1366_v46, %v1280_v21  ;;  %v1322_v52 = vpop.f32.mrb[23].mxu1  ;;  %v3354_v21 = vld [vmem:[%s4614_s3 + $0x110] sm:$0xff]   ;;  %v3357_v46 = vld [vmem:[%s4614_s3 + $0x128] sm:$0xff]  }
 0x42d   :  { %v1371_v53 = vadd.f32 %v1367_v49, %v1281_v47  ;;  %v3358_v47 = vld [vmem:[%s4614_s3 + $0x130] sm:$0xff]  }
 0x42e   :  { %v2660_v54 = vmul.f32 -1.442695, %v1370_v51  ;;  %v307_v49 = vld [vmem:[%s306_s22] ss:$8 sm:$0x7] }
 0x42f   :  { %v2661_v55 = vmul.f32 -1.442695, %v1371_v53  ;;  %309 = vst.msk [vmem:[#allocation2 + $0x34] ss:$8 sm:$0x7] %vm3658_vm1, %v307_v49  ;;  %v3364_v49 = vld [vmem:[%s4614_s3 + $0x160] sm:$0xff]  }
 0x430   :  { %v320_v50 = vld [vmem:[%s319_s16] ss:$8 sm:$0x7]  ;;  %v1508_v53 = vld [vmem:[#allocation2 + $0x30] sm:$0xf]  ;;  %s2561_s16 = smul.u32 24, %s377_s7 }
 0x431   :  { %3414 = vpow2.f32 %v2661_v55  ;;  %322 = vst.msk [vmem:[#allocation2 + $0x35] ss:$8 sm:$0x7] %vm3658_vm1, %v320_v50  ;;  %v333_v51 = vld [vmem:[%s332_s0] ss:$8 sm:$0x7] }
 0x432   :  { %3416 = vpow2.f32 %v2660_v54  ;;  %335 = vst.msk [vmem:[#allocation2 + $0x36] ss:$8 sm:$0x7] %vm3658_vm1, %v333_v51  ;;  %v346_v52 = vld [vmem:[%s345_s29] ss:$8 sm:$0x7]  ;;  %s383_s21 = sadd.s32 %s2561_s16, %s380_s14 }
 0x433   :  { %348 = vst.msk [vmem:[#allocation2 + $0x37] ss:$8 sm:$0x7] %vm3658_vm1, %v346_v52  ;;  %v1509_v54 = vld [vmem:[#allocation2 + $0x38] sm:$0xf]  ;;  %v3365_v50 = vld [vmem:[%s4614_s3 + $0x168] sm:$0xff]  }
 0x434   :  { %v3366_v51 = vld [vmem:[%s4614_s3 + $0x170] sm:$0xff]   ;;  %v3367_v52 = vld [vmem:[%s4614_s3 + $0x178] sm:$0xff]   ;;  %s2562_s0 = sld [smem:[#allocation3 + $0x1e]]  ;;  %s364_s29 = sshra.s32 %s2558_s24, 3 }
 0x435   :  { %s2559_s30 = smul.u32 24, %s364_s29  ;;  %s384_s24 = scalar_lea.vmem %s4612_s1, %s383_s21 }
 0x437   :  { %s370_s11 = sadd.s32 %s2559_s30, %s367_s27  ;;  %s416_s30 = sshra.s32 %s2566_s17, 3 }
 0x438   :  { %s371_s13 = scalar_lea.vmem %s4612_s1, %s370_s11  ;;  %s2567_s7 = smul.u32 24, %s416_s30 }
 0x43a   :  { %s390_s23 = sshra.s32 %s2562_s0, 3  ;;  %s393_s20 = sand.u32 7, %s2562_s0 }
 0x43b   :  { %v3415_v56 = vpop.eup %3414  ;;  %s2563_s15 = smul.u32 24, %s390_s23  ;;  %s422_s12 = sadd.s32 %s2567_s7, %s419_s6 }
 0x43c   :  { %v3417_v58 = vpop.eup %3416  ;;  %v1379_v59 = vadd.f32 1.0, %v3415_v56  ;;  %s423_s16 = scalar_lea.vmem %s4612_s1, %s422_s12  ;;  %s432_s23 = sand.u32 7, %s2568_s25 }
 0x43d   :  { %v1378_v60 = vadd.f32 1.0, %v3417_v58  ;;  %s396_s28 = sadd.s32 %s2563_s15, %s393_s20  ;;  %s2569_s20 = smul.u32 24, %s429_s9 }
 0x43e   :  { %3418 = vrcp.f32 %v1379_v59  ;;  %s397_s26 = scalar_lea.vmem %s4612_s1, %s396_s28  ;;  %s2564_s28 = sld [smem:[#allocation3 + $0x7]] }
 0x43f   :  { %3420 = vrcp.f32 %v1378_v60  ;;  %s435_s18 = sadd.s32 %s2569_s20, %s432_s23 }
 0x440   :  { %s436_s17 = scalar_lea.vmem %s4612_s1, %s435_s18 }
 0x444   :  { %s403_s0 = sshra.s32 %s2564_s28, 3  ;;  %s406_s29 = sand.u32 7, %s2564_s28 }
 0x445   :  { %s2565_s27 = smul.u32 24, %s403_s0 }
 0x447   :  { %s409_s8 = sadd.s32 %s2565_s27, %s406_s29 }
 0x448   :  { %v3419_v62 = vpop.eup %3418  ;;  %s410_s22 = scalar_lea.vmem %s4612_s1, %s409_s8 }
 0x449   :  { %v1358_v63 = vpop.f32.mrb[8].mxu0  ;;  %v1396_v0 = vmul.f32 %v3419_v62, %v1394_v61  ;;  %v3421_v32 = vpop.eup %3420  ;;  %v1391_v4 = vsub.f32 1.0, %v3419_v62 }
 0x44a   :  { %v1384_v14 = vadd.f32 %v3834_v57, %v1358_v63  ;;  %v3072_v19 = vpop.f32.mrb[9].mxu0  ;;  %v4220_v57 = vld [vmem:[%s4613_s2 + $0x20] ss:$12 sps:$4 sm:$0xff]  }
 0x44b   :  { %v1361_v20 = vpop.f32.mrb[10].mxu0 }
 0x44c   :  { %v1386_v22 = vrot.slane %v1384_v14, 4  ;;  %v3073_v24 = vpop.f32.mrb[11].mxu0 }
 0x44e   :  { %v1388_v34 = vmul.f32 %v3421_v32, %v1386_v22 }
 0x450   :  { %v1389_v36 = vadd.f32 %v1388_v34, %v1282_v33  ;;  %v4339_v34 = vld [vmem:[%s4615_s4] ss:$0 sm:$0xff] }
 0x452   :  { %3422 = vtanh.f32 %v1389_v36 }
 0x45c   :  { %v3423_v6 = vpop.eup %3422 }
 0x45d   :  { %v1392_v31 = vmul.f32 %v3423_v6, %v1391_v4 }
 0x45f   :  { %v4207_v7 = vadd.f32 %v1396_v0, %v1392_v31  ;;  %v1510_v31 = vld [vmem:[#allocation2 + $0x40] sm:$0xf] }
 0x461   :  { %v1398_v1 = vpack.c.bf16 %v4207_v7, %v4207_v7  ;;  %v1613_v22 = vrot.slane %v4207_v7, 4 }
 0x463   :  { %v1417_v8 = vrot.slane %v1398_v1, 2 }
 0x465   :  { %3091 = vmatmul.mubr.bf16.vlgmr.msra.gmra.mrb[0].mxu0 %v1417_v8  ;;  %1544 = vmatmul.mubr.bf16.vlgmr.msra.gmra.mrb[24].mxu1 %v1417_v8 }
 0x466   :  { %3095 = vmatpush3.bf16.msra.mxu1 %v4049_v37  ;;  %3110 = vmatprep.mubr.msk.bf16.mxu1 %vm3534_vm0, %v3533_v3 }
 0x467   :  { %3096 = vmatprep.subr.bf16.mxu1 %v3533_v3  ;;  %3130 = vmatprep.mubr.msk.bf16.mxu0 %vm3534_vm0, %v3533_v3 }
 0x468   :  { %3115 = vmatpush3.bf16.msra.mxu0 %v3352_v16 }
 0x469   :  { %3116 = vmatprep.subr.bf16.mxu0 %v3533_v3 }
 0x46a   :  { %3097 = vmatpush3.bf16.msra.mxu1 %v4220_v57 }
 0x46b   :  { %3098 = vmatprep.subr.bf16.mxu1 %v3533_v3 }
 0x46c   :  { %3117 = vmatpush3.bf16.msra.mxu0 %v3353_v18 }
 0x46d   :  { %3118 = vmatprep.subr.bf16.mxu0 %v3533_v3 }
 0x46e   :  { %3099 = vmatpush3.bf16.msra.mxu1 %v4227_v9 }
 0x46f   :  { %3100 = vmatprep.subr.bf16.mxu1 %v3533_v3 }
 0x470   :  { %3119 = vmatpush3.bf16.msra.mxu0 %v3354_v21 }
 0x471   :  { %3120 = vmatprep.subr.bf16.mxu0 %v3533_v3 }
 0x472   :  { %3101 = vmatpush3.bf16.msra.mxu1 %v4234_v10 }
 0x473   :  { %3102 = vmatprep.subr.bf16.mxu1 %v3533_v3 }
 0x476   :  { %3103 = vmatpush3.bf16.msra.mxu1 %v4241_v11 }
 0x477   :  { %3104 = vmatprep.subr.bf16.mxu1 %v3533_v3 }
 0x47a   :  { %3105 = vmatpush3.bf16.msra.mxu1 %v4248_v12 }
 0x47b   :  { %3106 = vmatprep.subr.bf16.mxu1 %v3533_v3 }
 0x47e   :  { %3107 = vmatpush3.bf16.msra.mxu1 %v4255_v13 }
 0x47f   :  { %3108 = vmatprep.subr.bf16.mxu1 %v3533_v3 }
 0x482   :  { %3109 = vmatpush3.bf16.msra.mxu1 %v4262_v15 }
 0x483   :  { %1727 = vmatprep.subr.bf16.mxu1 %v3958_v23 }
 0x485   :  { %3111 = vmatmul.mubr.bf16.vlgmr.msra.gmra.mrb[28].mxu1 %v1417_v8 }
 0x486   :  { %1728 = vmatpush1.bf16.msra.mxu1 %v3964_v43  ;;  %1759 = vmatprep.mubr.bf16.mxu1 %v3532_v2 }
 0x487   :  { %1729 = vmatprep.subr.bf16.mxu1 %v3971_v44 }
 0x48a   :  { %1730 = vmatpush1.bf16.msra.mxu1 %v4063_v38 }
 0x48b   :  { %1731 = vmatprep.subr.bf16.mxu1 %v4069_v39 }
 0x48e   :  { %1732 = vmatpush1.bf16.msra.mxu1 %v4077_v25 }
 0x48f   :  { %1733 = vmatprep.subr.bf16.mxu1 %v4083_v40 }
 0x492   :  { %1734 = vmatpush1.bf16.msra.mxu1 %v4091_v26 }
 0x493   :  { %1735 = vmatprep.subr.bf16.mxu1 %v4097_v41 }
 0x496   :  { %1736 = vmatpush1.bf16.msra.mxu1 %v4105_v27 }
 0x497   :  { %1737 = vmatprep.subr.bf16.mxu1 %v4111_v35 }
 0x49a   :  { %1738 = vmatpush1.bf16.msra.mxu1 %v4119_v28 }
 0x49b   :  { %1739 = vmatprep.subr.bf16.mxu1 %v4125_v42 }
 0x49e   :  { %1740 = vmatpush1.bf16.msra.mxu1 %v4133_v29 }
 0x49f   :  { %1741 = vmatprep.subr.bf16.mxu1 %v4139_v5 }
 0x4a2   :  { %1742 = vmatpush1.bf16.msra.mxu1 %v4147_v30 }
 0x4a3   :  { %1955 = vmatprep.subr.bf16.mxu1 %v3958_v23  ;;  %v3355_v23 = vld [vmem:[%s4614_s3 + $0x118] sm:$0xff]  }
 0x4a4   :  { %3121 = vmatpush3.bf16.msra.mxu0 %v3355_v23 }
 0x4a5   :  { %3122 = vmatprep.subr.bf16.mxu0 %v3533_v3 }
 0x4a8   :  { %3123 = vmatpush3.bf16.msra.mxu0 %v3356_v45 }
 0x4a9   :  { %3124 = vmatprep.subr.bf16.mxu0 %v3533_v3 }
 0x4ac   :  { %3125 = vmatpush3.bf16.msra.mxu0 %v3357_v46 }
 0x4ad   :  { %3126 = vmatprep.subr.bf16.mxu0 %v3533_v3 }
 0x4b0   :  { %3127 = vmatpush3.bf16.msra.mxu0 %v3358_v47  ;;  %v3362_v47 = vld [vmem:[%s4614_s3 + $0x150] sm:$0xff]  }
 0x4b1   :  { %3128 = vmatprep.subr.bf16.mxu0 %v3533_v3 }
 0x4b4   :  { %3129 = vmatpush3.bf16.msra.mxu0 %v3359_v48  ;;  %v3363_v48 = vld [vmem:[%s4614_s3 + $0x158] sm:$0xff]  }
 0x4b5   :  { %3134 = vmatprep.subr.bf16.mxu0 %v3533_v3 }
 0x538   :  { %v1545_v55 = vpop.f32.mrb[24].mxu1 }
 0x539   :  { %v1592_v56 = vadd.f32 %v1545_v55, %v1508_v53  ;;  %v1547_v58 = vpop.f32.mrb[25].mxu1  ;;  %v359_v53 = vld [vmem:[%s358_s10] ss:$8 sm:$0x7] }
 0x53a   :  { %v1593_v59 = vadd.f32 %v1547_v58, %v1509_v54  ;;  %v1549_v60 = vpop.f32.mrb[26].mxu1  ;;  %361 = vst.msk [vmem:[#allocation2 + $0x48] ss:$8 sm:$0x7] %vm3658_vm1, %v359_v53  ;;  %v1724_v58 = vld [vmem:[#allocation2 + $0x30] sm:$0xf0] }
 0x53b   :  { %v2686_v61 = vmul.f32 -1.442695, %v1592_v56  ;;  %v1550_v62 = vpop.f32.mrb[27].mxu1  ;;  %v372_v54 = vld [vmem:[%s371_s13] ss:$8 sm:$0x7] }
 0x53c   :  { %v2687_v63 = vmul.f32 -1.442695, %v1593_v59  ;;  %374 = vst.msk [vmem:[#allocation2 + $0x49] ss:$8 sm:$0x7] %vm3658_vm1, %v372_v54 }
 0x53d   :  { %v385_v55 = vld [vmem:[%s384_s24] ss:$8 sm:$0x7] }
 0x53e   :  { %3424 = vpow2.f32 %v2687_v63  ;;  %387 = vst.msk [vmem:[#allocation2 + $0x4a] ss:$8 sm:$0x7] %vm3658_vm1, %v385_v55  ;;  %v398_v56 = vld [vmem:[%s397_s26] ss:$8 sm:$0x7] }
 0x53f   :  { %3426 = vpow2.f32 %v2686_v61  ;;  %400 = vst.msk [vmem:[#allocation2 + $0x4b] ss:$8 sm:$0x7] %vm3658_vm1, %v398_v56  ;;  %v1725_v61 = vld [vmem:[#allocation2 + $0x38] sm:$0xf0]  ;;  %s2570_s26 = sld [smem:[#allocation3 + $0x1f]] }
 0x540   :  { %v3490_v53 = vld [vmem:[%s4613_s2] ss:$12 sps:$4 sm:$0xff]   ;;  %v3491_v54 = vld [vmem:[%s4613_s2 + $0x1c] ss:$12 sps:$4 sm:$0xff]  }
 0x545   :  { %s442_s15 = sshra.s32 %s2570_s26, 3  ;;  %s445_s21 = sand.u32 7, %s2570_s26 }
 0x546   :  { %s2571_s19 = smul.u32 24, %s442_s15 }
 0x548   :  { %v3425_v0 = vpop.eup %3424  ;;  %s448_s0 = sadd.s32 %s2571_s19, %s445_s21  ;;  %s3535_s19 = smov [#allocation6]  }
 0x549   :  { %v3427_v14 = vpop.eup %3426  ;;  %v1601_v19 = vadd.f32 1.0, %v3425_v0  ;;  %s449_s27 = scalar_lea.vmem %s4612_s1, %s448_s0  ;;  %s2404_s18 = sshll.u32 %s3535_s19, 4  ;;  %s2405_s18 = int_to_ptr.vmem [resolvable:$true] %s2404_s18 }
 0x54a   :  { %v1600_v20 = vadd.f32 1.0, %v3427_v14  ;;  %s3505_s24 = scalar_lea.vmem %s2405_s18, 64  ;;  %p3510_p6 = scmp.lt.s32.totalorder %s2405_s18, %s2405_s18 }
 0x54b   :  { %3428 = vrcp.f32 %v1601_v19  ;;  %p3506_p5 = scmp.ne.s32.totalorder %s2405_s18, %s3505_s24  ;;  %p3511_p7 = scmp.lt.s32.totalorder %s3505_s24, %s3505_s24 }
 0x54c   :  { %3430 = vrcp.f32 %v1600_v20 }
 0x54d   :  { %p3512_p8 = por %p3511_p7, %p3510_p6 }
 0x54f   :  { %p3513_p9 = pnand %p3512_p8, %p3506_p5 }
 0x555   :  { %v3429_v24 = vpop.eup %3428 }
 0x556   :  { %v1615_v32 = vmul.f32 %v3429_v24, %v1613_v22  ;;  %v3431_v6 = vpop.eup %3430  ;;  %v1610_v21 = vsub.f32 1.0, %v3429_v24 }
 0x558   :  { %v1586_v33 = vpop.f32.mrb[28].mxu1 }
 0x559   :  { %v1606_v36 = vadd.f32 %v4339_v34, %v1586_v33  ;;  %v3112_v4 = vpop.f32.mrb[29].mxu1 }
 0x55a   :  { %v1589_v1 = vpop.f32.mrb[30].mxu1 }
 0x55b   :  { %v1607_v8 = vmul.f32 %v3431_v6, %v1606_v36  ;;  %v3113_v16 = vpop.f32.mrb[31].mxu1 }
 0x55d   :  { %v1608_v18 = vadd.f32 %v1607_v8, %v1510_v31 }
 0x55f   :  { %3432 = vtanh.f32 %v1608_v18 }
 0x569   :  { %v3433_v7 = vpop.eup %3432 }
 0x56a   :  { %v1611_v23 = vmul.f32 %v3433_v7, %v1610_v21 }
 0x56c   :  { %v4342_v45 = vadd.f32 %v1615_v32, %v1611_v23 }
 0x56e   :  { %v1617_v46 = vpack.c.bf16 %v4342_v45, %v4342_v45  ;;  %v1838_v6 = vrot.slane %v4342_v45, 4 }
 0x570   :  { %3131 = vmatmul.mubr.bf16.vlgmr.msra.gmra.mrb[0].mxu0 %v1617_v46  ;;  %1760 = vmatmul.mubr.bf16.vlgmr.msra.gmra.mrb[32].mxu1 %v1617_v46 }
 0x571   :  { %3135 = vmatpush3.bf16.msra.mxu0 %v4049_v37  ;;  %3150 = vmatprep.mubr.msk.bf16.mxu0 %vm3534_vm0, %v3533_v3 }
 0x572   :  { %3136 = vmatprep.subr.bf16.mxu0 %v3533_v3  ;;  %1956 = vmatpush1.bf16.msra.mxu1 %v3964_v43  ;;  %v3360_v43 = vld [vmem:[%s4614_s3 + $0x140] sm:$0xff]  }
 0x573   :  { %1957 = vmatprep.subr.bf16.mxu1 %v3971_v44  ;;  %1987 = vmatprep.mubr.bf16.mxu1 %v3532_v2  ;;  %v3361_v44 = vld [vmem:[%s4614_s3 + $0x148] sm:$0xff]  }
 0x575   :  { %3137 = vmatpush3.bf16.msra.mxu0 %v4220_v57 }
 0x576   :  { %3138 = vmatprep.subr.bf16.mxu0 %v3533_v3  ;;  %1958 = vmatpush1.bf16.msra.mxu1 %v4063_v38 }
 0x577   :  { %1959 = vmatprep.subr.bf16.mxu1 %v4069_v39 }
 0x579   :  { %3139 = vmatpush3.bf16.msra.mxu0 %v4227_v9 }
 0x57a   :  { %3140 = vmatprep.subr.bf16.mxu0 %v3533_v3  ;;  %1960 = vmatpush1.bf16.msra.mxu1 %v4077_v25 }
 0x57b   :  { %1961 = vmatprep.subr.bf16.mxu1 %v4083_v40 }
 0x57d   :  { %3141 = vmatpush3.bf16.msra.mxu0 %v4234_v10 }
 0x57e   :  { %3142 = vmatprep.subr.bf16.mxu0 %v3533_v3  ;;  %1962 = vmatpush1.bf16.msra.mxu1 %v4091_v26 }
 0x57f   :  { %1963 = vmatprep.subr.bf16.mxu1 %v4097_v41 }
 0x581   :  { %3143 = vmatpush3.bf16.msra.mxu0 %v4241_v11 }
 0x582   :  { %3144 = vmatprep.subr.bf16.mxu0 %v3533_v3  ;;  %1964 = vmatpush1.bf16.msra.mxu1 %v4105_v27 }
 0x583   :  { %1965 = vmatprep.subr.bf16.mxu1 %v4111_v35 }
 0x585   :  { %3145 = vmatpush3.bf16.msra.mxu0 %v4248_v12 }
 0x586   :  { %3146 = vmatprep.subr.bf16.mxu0 %v3533_v3  ;;  %1966 = vmatpush1.bf16.msra.mxu1 %v4119_v28 }
 0x587   :  { %1967 = vmatprep.subr.bf16.mxu1 %v4125_v42 }
 0x589   :  { %3147 = vmatpush3.bf16.msra.mxu0 %v4255_v13 }
 0x58a   :  { %3148 = vmatprep.subr.bf16.mxu0 %v3533_v3  ;;  %1968 = vmatpush1.bf16.msra.mxu1 %v4133_v29 }
 0x58b   :  { %1969 = vmatprep.subr.bf16.mxu1 %v4139_v5 }
 0x58d   :  { %3149 = vmatpush3.bf16.msra.mxu0 %v4262_v15 }
 0x58e   :  { %3154 = vmatprep.subr.bf16.mxu0 %v3533_v3  ;;  %1970 = vmatpush1.bf16.msra.mxu1 %v4147_v30 }
 0x58f   :  { %3174 = vmatprep.subr.bf16.mxu1 %v3533_v3 }
 0x590   :  { %3151 = vmatmul.mubr.bf16.vlgmr.msra.gmra.mrb[12].mxu0 %v1617_v46 }
 0x591   :  { %3170 = vmatprep.mubr.msk.bf16.mxu0 %vm3534_vm0, %v3533_v3  ;;  %3155 = vmatpush3.bf16.msra.mxu0 %v3360_v43  ;;  %v1726_v43 = vld [vmem:[#allocation2 + $0x40] sm:$0xf0] }
 0x592   :  { %3156 = vmatprep.subr.bf16.mxu0 %v3533_v3 }
 0x595   :  { %3157 = vmatpush3.bf16.msra.mxu0 %v3361_v44 }
 0x596   :  { %3158 = vmatprep.subr.bf16.mxu0 %v3533_v3 }
 0x599   :  { %3159 = vmatpush3.bf16.msra.mxu0 %v3362_v47 }
 0x59a   :  { %3160 = vmatprep.subr.bf16.mxu0 %v3533_v3 }
 0x59d   :  { %3161 = vmatpush3.bf16.msra.mxu0 %v3363_v48 }
 0x59e   :  { %3162 = vmatprep.subr.bf16.mxu0 %v3533_v3 }
 0x5a1   :  { %3163 = vmatpush3.bf16.msra.mxu0 %v3364_v49 }
 0x5a2   :  { %3164 = vmatprep.subr.bf16.mxu0 %v3533_v3 }
 0x5a5   :  { %3165 = vmatpush3.bf16.msra.mxu0 %v3365_v50 }
 0x5a6   :  { %3166 = vmatprep.subr.bf16.mxu0 %v3533_v3 }
 0x5a9   :  { %3167 = vmatpush3.bf16.msra.mxu0 %v3366_v51 }
 0x5aa   :  { %3168 = vmatprep.subr.bf16.mxu0 %v3533_v3 }
 0x5ad   :  { %3169 = vmatpush3.bf16.msra.mxu0 %v3367_v52 }
 0x5ae   :  { %3194 = vmatprep.subr.bf16.mxu0 %v3533_v3 }
 0x643   :  { %v1761_v59 = vpop.f32.mrb[32].mxu1 }
 0x644   :  { %v1810_v60 = vrot.slane %v1761_v59, 4  ;;  %v1763_v62 = vpop.f32.mrb[33].mxu1 }
 0x645   :  { %v1811_v63 = vrot.slane %v1763_v62, 4  ;;  %v1765_v0 = vpop.f32.mrb[34].mxu1 }
 0x646   :  { %v1814_v14 = vadd.f32 %v1810_v60, %v1724_v58  ;;  %v1766_v19 = vpop.f32.mrb[35].mxu1 }
 0x647   :  { %v1815_v20 = vadd.f32 %v1811_v63, %v1725_v61 }
 0x648   :  { %v2712_v22 = vmul.f32 -1.442695, %v1814_v14 }
 0x649   :  { %v2713_v24 = vmul.f32 -1.442695, %v1815_v20 }
 0x64b   :  { %3434 = vpow2.f32 %v2713_v24 }
 0x64c   :  { %3436 = vpow2.f32 %v2712_v22 }
 0x655   :  { %v3435_v32 = vpop.eup %3434 }
 0x656   :  { %v3437_v33 = vpop.eup %3436  ;;  %v1823_v36 = vadd.f32 1.0, %v3435_v32 }
 0x657   :  { %v1822_v4 = vadd.f32 1.0, %v3437_v33 }
 0x658   :  { %3438 = vrcp.f32 %v1823_v36 }
 0x659   :  { %3440 = vrcp.f32 %v1822_v4 }
 0x662   :  { %v3439_v31 = vpop.eup %3438 }
 0x663   :  { %v1802_v1 = vpop.f32.mrb[12].mxu0  ;;  %v1840_v8 = vmul.f32 %v3439_v31, %v1838_v6  ;;  %v3441_v46 = vpop.eup %3440  ;;  %v1835_v48 = vsub.f32 1.0, %v3439_v31  ;;  %v1954_v6 = vld [vmem:[#allocation2 + $0x58] sm:$0xf] }
 0x664   :  { %v1828_v16 = vadd.f32 %v4339_v34, %v1802_v1  ;;  %v3152_v18 = vpop.f32.mrb[13].mxu0 }
 0x665   :  { %v1805_v21 = vpop.f32.mrb[14].mxu0 }
 0x666   :  { %v1830_v7 = vrot.slane %v1828_v16, 4  ;;  %v3153_v23 = vpop.f32.mrb[15].mxu0 }
 0x668   :  { %v1832_v44 = vmul.f32 %v3441_v46, %v1830_v7 }
 0x66a   :  { %v1833_v47 = vadd.f32 %v1832_v44, %v1726_v43  ;;  %v3492_v43 = vld [vmem:[%s4613_s2 + $0x8] ss:$12 sps:$4 sm:$0xff]   ;;  %v3383_v44 = vld [vmem:[%s4614_s3 + $0x1f8] sm:$0xff]  }
 0x66c   :  { %3442 = vtanh.f32 %v1833_v47 }
 0x676   :  { %v3443_v49 = vpop.eup %3442 }
 0x677   :  { %v1836_v50 = vmul.f32 %v3443_v49, %v1835_v48 }
 0x679   :  { %v4437_v51 = vadd.f32 %v1840_v8, %v1836_v50 }
 0x67b   :  { %v1842_v45 = vpack.c.bf16 %v4437_v51, %v4437_v51  ;;  %v2057_v17 = vrot.slane %v4437_v51, 4 }
 0x67d   :  { %v1861_v52 = vrot.slane %v1842_v45, 2 }
 0x67f   :  { %3171 = vmatmul.mubr.bf16.vlgmr.msra.gmra.mrb[0].mxu0 %v1861_v52  ;;  %1988 = vmatmul.mubr.bf16.vlgmr.msra.gmra.mrb[36].mxu1 %v1861_v52 }
 0x680   :  { %3175 = vmatpush3.bf16.msra.mxu1 %v4049_v37  ;;  %3190 = vmatprep.mubr.msk.bf16.mxu1 %vm3534_vm0, %v3533_v3  ;;  %v3489_v37 = vld [vmem:[%s4613_s2 + $0x4] ss:$12 sps:$4 sm:$0xff]  }
 0x681   :  { %3176 = vmatprep.subr.bf16.mxu1 %v3533_v3  ;;  %3210 = vmatprep.mubr.msk.bf16.mxu0 %vm3534_vm0, %v3533_v3 }
 0x684   :  { %3177 = vmatpush3.bf16.msra.mxu1 %v4220_v57 }
 0x685   :  { %3178 = vmatprep.subr.bf16.mxu1 %v3533_v3 }
 0x688   :  { %3179 = vmatpush3.bf16.msra.mxu1 %v4227_v9 }
 0x689   :  { %3180 = vmatprep.subr.bf16.mxu1 %v3533_v3 }
 0x68c   :  { %3181 = vmatpush3.bf16.msra.mxu1 %v4234_v10 }
 0x68d   :  { %3182 = vmatprep.subr.bf16.mxu1 %v3533_v3 }
 0x690   :  { %3183 = vmatpush3.bf16.msra.mxu1 %v4241_v11 }
 0x691   :  { %3184 = vmatprep.subr.bf16.mxu1 %v3533_v3 }
 0x694   :  { %3185 = vmatpush3.bf16.msra.mxu1 %v4248_v12 }
 0x695   :  { %3186 = vmatprep.subr.bf16.mxu1 %v3533_v3 }
 0x698   :  { %3187 = vmatpush3.bf16.msra.mxu1 %v4255_v13 }
 0x699   :  { %3188 = vmatprep.subr.bf16.mxu1 %v3533_v3 }
 0x69c   :  { %3189 = vmatpush3.bf16.msra.mxu1 %v4262_v15 }
 0x69d   :  { %2171 = vmatprep.subr.bf16.mxu1 %v3489_v37 }
 0x69f   :  { %3191 = vmatmul.mubr.bf16.vlgmr.msra.gmra.mrb[40].mxu1 %v1861_v52 }
 0x6a0   :  { %2172 = vmatpush1.bf16.msra.mxu1 %v3490_v53  ;;  %2203 = vmatprep.mubr.bf16.mxu1 %v3532_v2  ;;  %v3368_v2 = vld [vmem:[%s4614_s3 + $0x180] sm:$0xff]  }
 0x6a1   :  { %2173 = vmatprep.subr.bf16.mxu1 %v3491_v54  ;;  %3195 = vmatpush3.bf16.msra.mxu0 %v3368_v2 }
 0x6a2   :  { %3196 = vmatprep.subr.bf16.mxu0 %v3533_v3 }
 0x6a4   :  { %2174 = vmatpush1.bf16.msra.mxu1 %v4063_v38  ;;  %v3369_v38 = vld [vmem:[%s4614_s3 + $0x188] sm:$0xff]  }
 0x6a5   :  { %2175 = vmatprep.subr.bf16.mxu1 %v4069_v39  ;;  %3197 = vmatpush3.bf16.msra.mxu0 %v3369_v38  ;;  %v3370_v39 = vld [vmem:[%s4614_s3 + $0x190] sm:$0xff]  }
 0x6a6   :  { %3198 = vmatprep.subr.bf16.mxu0 %v3533_v3 }
 0x6a8   :  { %2176 = vmatpush1.bf16.msra.mxu1 %v4077_v25  ;;  %v3371_v25 = vld [vmem:[%s4614_s3 + $0x198] sm:$0xff]  }
 0x6a9   :  { %2177 = vmatprep.subr.bf16.mxu1 %v4083_v40  ;;  %3199 = vmatpush3.bf16.msra.mxu0 %v3370_v39  ;;  %v3372_v40 = vld [vmem:[%s4614_s3 + $0x1a0] sm:$0xff]  }
 0x6aa   :  { %3200 = vmatprep.subr.bf16.mxu0 %v3533_v3 }
 0x6ac   :  { %2178 = vmatpush1.bf16.msra.mxu1 %v4091_v26  ;;  %v3373_v26 = vld [vmem:[%s4614_s3 + $0x1a8] sm:$0xff]  }
 0x6ad   :  { %2179 = vmatprep.subr.bf16.mxu1 %v4097_v41  ;;  %3201 = vmatpush3.bf16.msra.mxu0 %v3371_v25  ;;  %v3374_v41 = vld [vmem:[%s4614_s3 + $0x1b0] sm:$0xff]  }
 0x6ae   :  { %3202 = vmatprep.subr.bf16.mxu0 %v3533_v3 }
 0x6b0   :  { %2180 = vmatpush1.bf16.msra.mxu1 %v4105_v27  ;;  %v3375_v27 = vld [vmem:[%s4614_s3 + $0x1b8] sm:$0xff]  }
 0x6b1   :  { %2181 = vmatprep.subr.bf16.mxu1 %v4111_v35  ;;  %3203 = vmatpush3.bf16.msra.mxu0 %v3372_v40  ;;  %v411_v35 = vld [vmem:[%s410_s22] ss:$8 sm:$0x7] }
 0x6b2   :  { %3204 = vmatprep.subr.bf16.mxu0 %v3533_v3  ;;  %413 = vst.msk [vmem:[#allocation2 + $0x4c] ss:$8 sm:$0x7] %vm3658_vm1, %v411_v35 }
 0x6b4   :  { %2182 = vmatpush1.bf16.msra.mxu1 %v4119_v28  ;;  %v424_v28 = vld [vmem:[%s423_s16] ss:$8 sm:$0x7] }
 0x6b5   :  { %2183 = vmatprep.subr.bf16.mxu1 %v4125_v42  ;;  %3205 = vmatpush3.bf16.msra.mxu0 %v3373_v26  ;;  %426 = vst.msk [vmem:[#allocation2 + $0x4d] ss:$8 sm:$0x7] %vm3658_vm1, %v424_v28  ;;  %v437_v42 = vld [vmem:[%s436_s17] ss:$8 sm:$0x7] }
 0x6b6   :  { %3206 = vmatprep.subr.bf16.mxu0 %v3533_v3  ;;  %439 = vst.msk [vmem:[#allocation2 + $0x4e] ss:$8 sm:$0x7] %vm3658_vm1, %v437_v42 }
 0x6b8   :  { %2184 = vmatpush1.bf16.msra.mxu1 %v4133_v29  ;;  %v450_v29 = vld [vmem:[%s449_s27] ss:$8 sm:$0x7] }
 0x6b9   :  { %2185 = vmatprep.subr.bf16.mxu1 %v4139_v5  ;;  %3207 = vmatpush3.bf16.msra.mxu0 %v3374_v41  ;;  %452 = vst.msk [vmem:[#allocation2 + $0x4f] ss:$8 sm:$0x7] %vm3658_vm1, %v450_v29  ;;  %v1952_v5 = vld [vmem:[#allocation2 + $0x48] sm:$0xf] }
 0x6ba   :  { %3208 = vmatprep.subr.bf16.mxu0 %v3533_v3 }
 0x6bc   :  { %2186 = vmatpush1.bf16.msra.mxu1 %v4147_v30  ;;  %v1953_v30 = vld [vmem:[#allocation2 + $0x50] sm:$0xf] }
 0x6bd   :  { %3209 = vmatpush3.bf16.msra.mxu0 %v3375_v27 }
 0x6be   :  { %3214 = vmatprep.subr.bf16.mxu0 %v3533_v3 }
 0x6c0   :  { %v2168_v47 = vld [vmem:[#allocation2 + $0x48] sm:$0xf0]  ;;  %v2169_v50 = vld [vmem:[#allocation2 + $0x50] sm:$0xf0] }
 0x752   :  { %v1989_v55 = vpop.f32.mrb[36].mxu1 }
 0x753   :  { %v2036_v56 = vadd.f32 %v1989_v55, %v1952_v5  ;;  %v1991_v58 = vpop.f32.mrb[37].mxu1 }
 0x754   :  { %v2037_v59 = vadd.f32 %v1991_v58, %v1953_v30  ;;  %v1993_v60 = vpop.f32.mrb[38].mxu1 }
 0x755   :  { %v2738_v61 = vmul.f32 -1.442695, %v2036_v56  ;;  %v1994_v62 = vpop.f32.mrb[39].mxu1  ;;  %v2170_v56 = vld [vmem:[#allocation2 + $0x58] sm:$0xf0] }
 0x756   :  { %v2739_v63 = vmul.f32 -1.442695, %v2037_v59 }
 0x758   :  { %3444 = vpow2.f32 %v2739_v63 }
 0x759   :  { %3446 = vpow2.f32 %v2738_v61 }
 0x762   :  { %v3445_v0 = vpop.eup %3444 }
 0x763   :  { %v3447_v14 = vpop.eup %3446  ;;  %v2045_v19 = vadd.f32 1.0, %v3445_v0 }
 0x764   :  { %v2044_v20 = vadd.f32 1.0, %v3447_v14 }
 0x765   :  { %3448 = vrcp.f32 %v2045_v19 }
 0x766   :  { %3450 = vrcp.f32 %v2044_v20 }
 0x76f   :  { %v3449_v22 = vpop.eup %3448 }
 0x770   :  { %v2059_v24 = vmul.f32 %v3449_v22, %v2057_v17  ;;  %v3451_v4 = vpop.eup %3450  ;;  %v2054_v18 = vsub.f32 1.0, %v3449_v22 }
 0x772   :  { %v2030_v32 = vpop.f32.mrb[40].mxu1 }
 0x773   :  { %v2050_v33 = vadd.f32 %v4339_v34, %v2030_v32  ;;  %v3192_v36 = vpop.f32.mrb[41].mxu1 }
 0x774   :  { %v2033_v31 = vpop.f32.mrb[42].mxu1 }
 0x775   :  { %v2051_v1 = vmul.f32 %v3451_v4, %v2050_v33  ;;  %v3193_v8 = vpop.f32.mrb[43].mxu1 }
 0x777   :  { %v2052_v16 = vadd.f32 %v2051_v1, %v1954_v6 }
 0x779   :  { %3452 = vtanh.f32 %v2052_v16 }
 0x783   :  { %v3453_v21 = vpop.eup %3452 }
 0x784   :  { %v2055_v7 = vmul.f32 %v3453_v21, %v2054_v18 }
 0x786   :  { %v4537_v23 = vadd.f32 %v2059_v24, %v2055_v7 }
 0x788   :  { %v2061_v46 = vpack.c.bf16 %v4537_v23, %v4537_v23  ;;  %v2282_v26 = vrot.slane %v4537_v23, 4 }
 0x78a   :  { %3211 = vmatmul.mubr.bf16.vlgmr.msra.gmra.mrb[0].mxu0 %v2061_v46  ;;  %2204 = vmatmul.mubr.bf16.vlgmr.msra.gmra.mrb[44].mxu1 %v2061_v46 }
 0x78b   :  { %3215 = vmatpush3.bf16.msra.mxu0 %v3492_v43  ;;  %3230 = vmatprep.mubr.msk.bf16.mxu0 %vm3534_vm0, %v3533_v3 }
 0x78c   :  { %3216 = vmatprep.subr.bf16.mxu0 %v3533_v3 }
 0x78f   :  { %3217 = vmatpush3.bf16.msra.mxu0 %v4220_v57  ;;  %v3376_v57 = vld [vmem:[%s4614_s3 + $0x1c0] sm:$0xff]  }
 0x790   :  { %3218 = vmatprep.subr.bf16.mxu0 %v3533_v3 }
 0x793   :  { %3219 = vmatpush3.bf16.msra.mxu0 %v4227_v9  ;;  %v3377_v9 = vld [vmem:[%s4614_s3 + $0x1c8] sm:$0xff]  }
 0x794   :  { %3220 = vmatprep.subr.bf16.mxu0 %v3533_v3 }
 0x797   :  { %3221 = vmatpush3.bf16.msra.mxu0 %v4234_v10  ;;  %v3378_v10 = vld [vmem:[%s4614_s3 + $0x1d0] sm:$0xff]  }
 0x798   :  { %3222 = vmatprep.subr.bf16.mxu0 %v3533_v3 }
 0x79b   :  { %3223 = vmatpush3.bf16.msra.mxu0 %v4241_v11  ;;  %v3379_v11 = vld [vmem:[%s4614_s3 + $0x1d8] sm:$0xff]  }
 0x79c   :  { %3224 = vmatprep.subr.bf16.mxu0 %v3533_v3 }
 0x79f   :  { %3225 = vmatpush3.bf16.msra.mxu0 %v4248_v12  ;;  %v3380_v12 = vld [vmem:[%s4614_s3 + $0x1e0] sm:$0xff]  }
 0x7a0   :  { %3226 = vmatprep.subr.bf16.mxu0 %v3533_v3 }
 0x7a3   :  { %3227 = vmatpush3.bf16.msra.mxu0 %v4255_v13  ;;  %v3381_v13 = vld [vmem:[%s4614_s3 + $0x1e8] sm:$0xff]  }
 0x7a4   :  { %3228 = vmatprep.subr.bf16.mxu0 %v3533_v3 }
 0x7a7   :  { %3229 = vmatpush3.bf16.msra.mxu0 %v4262_v15  ;;  %v3382_v15 = vld [vmem:[%s4614_s3 + $0x1f0] sm:$0xff]  }
 0x7a8   :  { %3234 = vmatprep.subr.bf16.mxu0 %v3533_v3 }
 0x7aa   :  { %3231 = vmatmul.mubr.bf16.vlgmr.msra.gmra.mrb[16].mxu0 %v2061_v46 }
 0x7ab   :  { %3250 = vmatprep.mubr.msk.bf16.mxu0 %vm3534_vm0, %v3533_v3  ;;  %3235 = vmatpush3.bf16.msra.mxu0 %v3376_v57 }
 0x7ac   :  { %3236 = vmatprep.subr.bf16.mxu0 %v3533_v3 }
 0x7af   :  { %3237 = vmatpush3.bf16.msra.mxu0 %v3377_v9 }
 0x7b0   :  { %3238 = vmatprep.subr.bf16.mxu0 %v3533_v3 }
 0x7b3   :  { %3239 = vmatpush3.bf16.msra.mxu0 %v3378_v10 }
 0x7b4   :  { %3240 = vmatprep.subr.bf16.mxu0 %v3533_v3 }
 0x7b7   :  { %3241 = vmatpush3.bf16.msra.mxu0 %v3379_v11 }
 0x7b8   :  { %3242 = vmatprep.subr.bf16.mxu0 %v3533_v3 }
 0x7bb   :  { %3243 = vmatpush3.bf16.msra.mxu0 %v3380_v12 }
 0x7bc   :  { %3244 = vmatprep.subr.bf16.mxu0 %v3533_v3 }
 0x7bf   :  { %3245 = vmatpush3.bf16.msra.mxu0 %v3381_v13 }
 0x7c0   :  { %3246 = vmatprep.subr.bf16.mxu0 %v3533_v3 }
 0x7c3   :  { %3247 = vmatpush3.bf16.msra.mxu0 %v3382_v15 }
 0x7c4   :  { %3248 = vmatprep.subr.bf16.mxu0 %v3533_v3 }
 0x7c7   :  { %3249 = vmatpush3.bf16.msra.mxu0 %v3383_v44 }
 0x85d   :  { %v2205_v48 = vpop.f32.mrb[44].mxu1 }
 0x85e   :  { %v2254_v49 = vrot.slane %v2205_v48, 4  ;;  %v2207_v51 = vpop.f32.mrb[45].mxu1 }
 0x85f   :  { %v2255_v45 = vrot.slane %v2207_v51, 4  ;;  %v2209_v52 = vpop.f32.mrb[46].mxu1 }
 0x860   :  { %v2258_v37 = vadd.f32 %v2254_v49, %v2168_v47  ;;  %v2210_v53 = vpop.f32.mrb[47].mxu1 }
 0x861   :  { %v2259_v54 = vadd.f32 %v2255_v45, %v2169_v50 }
 0x862   :  { %v2764_v2 = vmul.f32 -1.442695, %v2258_v37 }
 0x863   :  { %v2765_v38 = vmul.f32 -1.442695, %v2259_v54 }
 0x865   :  { %3454 = vpow2.f32 %v2765_v38 }
 0x866   :  { %3456 = vpow2.f32 %v2764_v2 }
 0x86f   :  { %v3455_v39 = vpop.eup %3454 }
 0x870   :  { %v3457_v25 = vpop.eup %3456  ;;  %v2267_v40 = vadd.f32 1.0, %v3455_v39 }
 0x871   :  { %v2266_v3 = vadd.f32 1.0, %v3457_v25 }
 0x872   :  { %3458 = vrcp.f32 %v2267_v40 }
 0x873   :  { %3460 = vrcp.f32 %v2266_v3 }
 0x87c   :  { %v3459_v41 = vpop.eup %3458 }
 0x87d   :  { %v2246_v27 = vpop.f32.mrb[16].mxu0  ;;  %v2284_v35 = vmul.f32 %v3459_v41, %v2282_v26  ;;  %v3461_v55 = vpop.eup %3460  ;;  %v2279_v60 = vsub.f32 1.0, %v3459_v41 }
 0x87e   :  { %v2272_v28 = vadd.f32 %v4339_v34, %v2246_v27  ;;  %v3232_v42 = vpop.f32.mrb[17].mxu0  ;;  %v2572_v34 = vld [vmem:[%s4615_s4 + $0x1] ss:$0 sm:$0xff] }
 0x87f   :  { %v2249_v29 = vpop.f32.mrb[18].mxu0 }
 0x880   :  { %v2274_v5 = vrot.slane %v2272_v28, 4  ;;  %v3233_v30 = vpop.f32.mrb[19].mxu0 }
 0x882   :  { %v2276_v58 = vmul.f32 %v3461_v55, %v2274_v5 }
 0x884   :  { %v2277_v59 = vadd.f32 %v2276_v58, %v2170_v56 }
 0x886   :  { %3462 = vtanh.f32 %v2277_v59 }
 0x890   :  { %v3463_v61 = vpop.eup %3462 }
 0x891   :  { %v2280_v62 = vmul.f32 %v3463_v61, %v2279_v60 }
 0x893   :  { %v2285_v63 = vadd.f32 %v2284_v35, %v2280_v62 }
 0x895   :  { %v2286_v0 = vpack.c.bf16 %v2285_v63, %v2285_v63 }
 0x897   :  { %v2305_v14 = vrot.slane %v2286_v0, 2 }
 0x899   :  { %3251 = vmatmul.mubr.bf16.vlgmr.msra.gmra.mrb[0].mxu0 %v2305_v14 }
 0x96c   :  { %v2389_v19 = vpop.f32.mrb[0].mxu0 }
 0x96d   :  { %v3254_v20 = vadd.f32 %v2572_v34, %v2389_v19  ;;  %v3252_v17 = vpop.f32.mrb[1].mxu0 }
 0x96e   :  { %v2392_v22 = vpop.f32.mrb[2].mxu0 }
 0x96f   :  { %v3253_v24 = vpop.f32.mrb[3].mxu0  ;;  %2397 = vst.msk [vmem:[#allocation6] sm:$0xf] %vm2396_vm2, %v3254_v20 }
 0x970   :  { %3516 = shalt.err (!%p3513_p9)
}
 0x971   :  { %s3517_s4 = scalar_lea.hbm %s4616_s5, 64 }
 0x972   :  { %p3518_p10 = scmp.ne.s32.totalorder %s4616_s5, %s3517_s4  ;;  %p3521_p11 = scmp.lt.u32.totalorder %s3517_s4, %s4616_s5 }
 0x974   :  { %p3523_p12 = pnand %p3521_p11, %p3518_p10 }
 0x976   :  { %3526 = shalt.err (!%p3523_p12)
}
 0x977   :  { %2407 = dma.vmem_to_hbm [thread:$0]  %s2405_s18, 64, %s4616_s5, [#allocation4]  }
 0x978   :  { %3529 = dma.done.wait [#allocation4], 64  }
 0x979   :  { %3530 = vsyncadd [#allocation4], 4294967232 }
 0x97a   :  { %2411 = vsyncpa [#allocation4], 1 }
 0x97b   :  { %2412 = vsyncpa [#allocation5], 1 }

</bundles_post_ra>
